<compile_context>
chip_gen: v6e
topology: v6e:2x2x1
jax: 0.10.0
libtpu: 0.0.40
codegen_flags: <defaults>
</compile_context>

<pallas_src>
import functools

import jax
import jax.numpy as jnp
from jax import lax
from jax.experimental import pallas as pl
from jax.experimental.pallas import tpu as pltpu


# ----------------------------------------------------------------------------
# Fused inception kernel (one grid step = one batch element)
# ----------------------------------------------------------------------------
def inception_kernel(x_ref, w1_ref, wt_ref, w4_ref,
                     sh1_ref, sh23_ref, sh4_ref, o_ref,
                     *, H, W, cv1, cv1_pad, c3r, c5r, c3o, c5o, cpo):
    """All four inception branches in channel-major (C, H*W) lane-dense layout.

    x_ref:    (1, Cin, HW) f32               input, spatial flattened
    w1_ref:   (cv1+pad+c3r+c5r, Cin) bf16    fused 1x1 weights (b1 | 3x3red | 5x5red)
    wt_ref:   (25, c3o+c5o, c3r+c5r) bf16    per-(dy,dx) fused 3x3/5x5 weight blocks
    w4_ref:   (cpo, Cin) bf16                1x1 conv after the 3x3 maxpool
    sh*_ref:  (rows, 1) f32                  folded BN shift (conv bias + BN)
    o_ref:    (1, cv1+c3o+c5o+cpo, HW) f32   concatenated output, channel-major
    """
    HW = H * W
    xf = x_ref[0]                                       # (Cin, HW) f32

    # ---- spatial row/col of every flattened position; boundary masks built
    # once and shared by every tap of every branch ----------------------------
    q = lax.broadcasted_iota(jnp.int32, (1, HW), 1)
    if W & (W - 1) == 0:                                # power-of-two fast path
        row = q >> (W.bit_length() - 1)
        col = q & (W - 1)
    else:
        row = q // W
        col = q % W
    row_ok = {dy: (row >= -dy) & (row < H - dy) for dy in range(-2, 3)}
    col_ok = {dx: (col >= -dx) & (col < W - dx) for dx in range(-2, 3)}
    mask_f = {(dy, dx): (row_ok[dy] & col_ok[dx]).astype(jnp.float32)
              for dy in range(-2, 3) for dx in range(-2, 3) if (dy, dx) != (0, 0)}

    def shift(v, dy, dx):
        """result[:, i*W+j] = v[:, (i+dy)*W+(j+dx)] (boundary handled by masks)."""
        s = dy * W + dx
        return v if s == 0 else pltpu.roll(v, (-s) % HW, 1)

    # ---- branch1 + both reduces: ONE fused 1x1 MXU dot over the shared input
    y1 = jnp.dot(w1_ref[...], xf.astype(jnp.bfloat16),
                 preferred_element_type=jnp.float32)
    y1 = jnp.maximum(y1 + sh1_ref[...], 0.0)
    o_ref[0, 0:cv1, :] = y1[0:cv1, :].astype(o_ref.dtype)

    # ---- branches 2 & 3: one roll + one mask per (dy,dx) offset feeds both
    # branches through a fused per-offset weight block; f32 accumulation ------
    red0 = cv1 + cv1_pad
    x23 = y1[red0:red0 + c3r + c5r, :]                  # [x2a ; x3a], f32
    acc = jnp.zeros((c3o + c5o, HW), jnp.float32)
    for dy in range(-2, 3):
        for dx in range(-2, 3):
            t = (dy + 2) * 5 + (dx + 2)
            tap = shift(x23, dy, dx)
            if (dy, dx) != (0, 0):
                tap = tap * mask_f[(dy, dx)]            # zero-pad out-of-image
            acc = acc + jnp.dot(wt_ref[t], tap.astype(jnp.bfloat16),
                                preferred_element_type=jnp.float32)
    y23 = jnp.maximum(acc + sh23_ref[...], 0.0)
    o_ref[0, cv1:cv1 + c3o + c5o, :] = y23.astype(o_ref.dtype)

    # ---- branch4: separable 3x3/s1 maxpool (-inf boundary), then 1x1 conv ---
    cmax = xf
    for dx in (-1, 1):
        cmax = jnp.maximum(cmax,
                           jnp.where(col_ok[dx], shift(xf, 0, dx), -jnp.inf))
    pmax = cmax                                          # center tap => finite
    for dy in (-1, 1):
        pmax = jnp.maximum(pmax,
                           jnp.where(row_ok[dy], shift(cmax, dy, 0), -jnp.inf))
    y4 = jnp.dot(w4_ref[...], pmax.astype(jnp.bfloat16),
                 preferred_element_type=jnp.float32)
    y4 = jnp.maximum(y4 + sh4_ref[...], 0.0)
    c_off = cv1 + c3o + c5o
    o_ref[0, c_off:c_off + cpo, :] = y4.astype(o_ref.dtype)


# ----------------------------------------------------------------------------
# Parameter folding (eval-mode BN + conv bias folded into weights / shifts)
# ----------------------------------------------------------------------------
def _fold_bn(p, eps=1e-5):
    scale = p["gamma"] / jnp.sqrt(p["var"] + eps)
    shift = p["beta"] + (p["b"] - p["mean"]) * scale
    return scale.astype(jnp.float32), shift.astype(jnp.float32)


def _w1x1(p, scale):
    """1x1 HWIO conv weight -> (Cout, Cin) matrix, BN scale folded in."""
    return (jnp.transpose(p["w"][0, 0], (1, 0)) * scale[:, None]).astype(jnp.float32)


def _prepare_kernel_params(params):
    s1, h1 = _fold_bn(params["b1"])
    s2a, h2a = _fold_bn(params["b2a"])
    s2b, h2b = _fold_bn(params["b2b"])
    s3a, h3a = _fold_bn(params["b3a"])
    s3b, h3b = _fold_bn(params["b3b"])
    s4, h4 = _fold_bn(params["b4"])

    w3 = params["b2b"]["w"]          # (3, 3, c3r, c3o) HWIO
    w5 = params["b3b"]["w"]          # (5, 5, c5r, c5o) HWIO
    c3r, c3o = w3.shape[2], w3.shape[3]
    c5r, c5o = w5.shape[2], w5.shape[3]
    cv1 = params["b1"]["w"].shape[3]
    cin = params["b1"]["w"].shape[2]
    cv1_pad = (-cv1) % 8             # keep the reduce rows sublane-aligned

    # Fused 1x1: [branch1 | pad | 3x3-reduce | 5x5-reduce] along Cout.
    w1 = jnp.concatenate([_w1x1(params["b1"], s1),
                          jnp.zeros((cv1_pad, cin), jnp.float32),
                          _w1x1(params["b2a"], s2a),
                          _w1x1(params["b3a"], s3a)], axis=0)
    sh1 = jnp.concatenate([h1, jnp.zeros((cv1_pad,), jnp.float32),
                           h2a, h3a])[:, None]

    # Per-(dy,dx) fused weight block for branches 2 & 3:
    #   rows 0:c3o read x2a (cols 0:c3r), rows c3o: read x3a (cols c3r:).
    blocks = []
    for dy in range(-2, 3):
        for dx in range(-2, 3):
            if abs(dy) <= 1 and abs(dx) <= 1:
                top = (w3[dy + 1, dx + 1] * s2b[None, :]).T       # (c3o, c3r)
            else:
                top = jnp.zeros((c3o, c3r), jnp.float32)
            bot = (w5[dy + 2, dx + 2] * s3b[None, :]).T           # (c5o, c5r)
            blocks.append(jnp.concatenate([
                jnp.concatenate([top, jnp.zeros((c3o, c5r), jnp.float32)], 1),
                jnp.concatenate([jnp.zeros((c5o, c3r), jnp.float32), bot], 1)],
                axis=0))
    wt = jnp.stack(blocks, axis=0)
    sh23 = jnp.concatenate([h2b, h3b])[:, None]

    w4 = _w1x1(params["b4"], s4)
    sh4 = h4[:, None]

    return dict(w1=w1.astype(jnp.bfloat16), sh1=sh1,
                wt=wt.astype(jnp.bfloat16), sh23=sh23,
                w4=w4.astype(jnp.bfloat16), sh4=sh4,
                dims=dict(cv1=cv1, cv1_pad=cv1_pad, c3r=c3r, c5r=c5r,
                          c3o=c3o, c5o=c5o, cpo=w4.shape[0]))


# ----------------------------------------------------------------------------
# Full module forward (NCHW in / NCHW out, inference semantics)
# ----------------------------------------------------------------------------
@jax.jit
def reduc_inception_forward(x_nchw, params):
    B, Cin, H, W = x_nchw.shape
    HW = H * W
    kp = _prepare_kernel_params(params)
    d = kp["dims"]
    c_total = d["cv1"] + d["c3o"] + d["c5o"] + d["cpo"]
    # NOTE: demo channel counts are all multiples of 8 so every o_ref channel
    # slice is a full-sublane store; for odd configs, pad branch outputs to 8.

    x_flat = x_nchw.reshape(B, Cin, HW).astype(jnp.float32)   # contiguous, free
    kernel = functools.partial(inception_kernel, H=H, W=W, **d)

    out = pl.pallas_call(
        kernel,
        out_shape=jax.ShapeDtypeStruct((B, c_total, HW), jnp.float32),
        grid=(B,),                       # >= 2 steps -> both v7x TCs stay busy
        in_specs=[
            pl.BlockSpec((1, Cin, HW), lambda b: (b, 0, 0)),
            pl.BlockSpec(kp["w1"].shape, lambda b: (0, 0)),
            pl.BlockSpec(kp["wt"].shape, lambda b: (0, 0, 0)),
            pl.BlockSpec(kp["w4"].shape, lambda b: (0, 0)),
            pl.BlockSpec(kp["sh1"].shape, lambda b: (0, 0)),
            pl.BlockSpec(kp["sh23"].shape, lambda b: (0, 0)),
            pl.BlockSpec(kp["sh4"].shape, lambda b: (0, 0)),
        ],
        out_specs=pl.BlockSpec((1, c_total, HW), lambda b: (b, 0, 0)),
        compiler_params=pltpu.CompilerParams(
            dimension_semantics=("parallel",)),
    )(x_flat, kp["w1"], kp["wt"], kp["w4"], kp["sh1"], kp["sh23"], kp["sh4"])

    return out.reshape(B, c_total, H, W)                # already NCHW


# ----------------------------------------------------------------------------
# Parameter construction (matches nn.Conv2d / nn.BatchNorm2d shapes)
# ----------------------------------------------------------------------------
def make_conv_block_params(key, cin, cout, ksize):
    ks = jax.random.split(key, 6)
    return {
        "w": 0.1 * jax.random.normal(ks[0], (ksize, ksize, cin, cout), jnp.float32),
        "b": 0.1 * jax.random.normal(ks[1], (cout,), jnp.float32),
        "gamma": jax.random.uniform(ks[2], (cout,), jnp.float32, 0.5, 1.5),
        "beta": 0.1 * jax.random.normal(ks[3], (cout,), jnp.float32),
        "mean": 0.1 * jax.random.normal(ks[4], (cout,), jnp.float32),
        "var": jax.random.uniform(ks[5], (cout,), jnp.float32, 0.5, 1.5),
    }


def make_reduc_inception_params(key, in_features, cv1_out, cv3_red, cv3_out,
                                cv5_red, cv5_out, pool_out):
    ks = jax.random.split(key, 6)
    return {
        "b1": make_conv_block_params(ks[0], in_features, cv1_out, 1),
        "b2a": make_conv_block_params(ks[1], in_features, cv3_red, 1),
        "b2b": make_conv_block_params(ks[2], cv3_red, cv3_out, 3),
        "b3a": make_conv_block_params(ks[3], in_features, cv5_red, 1),
        "b3b": make_conv_block_params(ks[4], cv5_red, cv5_out, 5),
        "b4": make_conv_block_params(ks[5], in_features, pool_out, 1),
    }


# ----------------------------------------------------------------------------
# Pure-JAX reference (f32, for verification)
# ----------------------------------------------------------------------------
def _ref_conv_block(x_nchw, p, padding):
    scale, shift = _fold_bn(p)
    w_oihw = jnp.transpose(p["w"], (3, 2, 0, 1))
    y = lax.conv_general_dilated(
        x_nchw, w_oihw, window_strides=(1, 1),
        padding=[(padding, padding), (padding, padding)],
        dimension_numbers=("NCHW", "OIHW", "NCHW"),
        precision=lax.Precision.HIGHEST)
    return jnp.maximum(y * scale[None, :, None, None]
                       + shift[None, :, None, None], 0.0)


def _ref_forward(x, params):
    x1 = _ref_conv_block(x, params["b1"], 0)
    x2 = _ref_conv_block(_ref_conv_block(x, params["b2a"], 0), params["b2b"], 1)
    x3 = _ref_conv_block(_ref_conv_block(x, params["b3a"], 0), params["b3b"], 2)
    xp = lax.reduce_window(x, -jnp.inf, lax.max, (1, 1, 3, 3), (1, 1, 1, 1),
                           [(0, 0), (0, 0), (1, 1), (1, 1)])
    x4 = _ref_conv_block(xp, params["b4"], 0)
    return jnp.concatenate([x1, x2, x3, x4], axis=1)


# ----------------------------------------------------------------------------
if __name__ == "__main__":
    key = jax.random.PRNGKey(0)
    k_x, k_p = jax.random.split(key)

    # Small shapes consistent with the module: B=2, Cin=4, H=W=16.
    B, Cin, H, W = 2, 4, 16, 16
    cv1_out, cv3_red, cv3_out, cv5_red, cv5_out, pool_out = 8, 4, 8, 4, 8, 8

    x = jax.random.normal(k_x, (B, Cin, H, W), jnp.float32)
    params = make_reduc_inception_params(
        k_p, Cin, cv1_out, cv3_red, cv3_out, cv5_red, cv5_out, pool_out)

    out = jax.block_until_ready(reduc_inception_forward(x, params))

    expected_channels = cv1_out + cv3_out + cv5_out + pool_out
    assert out.shape == (B, expected_channels, H, W), out.shape

    ref = jax.block_until_ready(_ref_forward(x, params))
    max_err = float(jnp.abs(out - ref).max())
    # bf16 MXU operands (f32 accumulation) -> looser tolerance than pure f32.
    assert jnp.allclose(out, ref, atol=2e-2, rtol=2e-2), max_err

    print("KERNEL_OK")
</pallas_src>

<mosaic_0001>
module attributes {stable_mosaic.version = 11 : i64} {
  func.func @inception_kernel(%arg0: i32, %arg1: memref<1x4x256xf32, #tpu.memory_space<vmem>>, %arg2: memref<16x4xbf16, #tpu.memory_space<vmem>>, %arg3: memref<25x16x8xbf16, #tpu.memory_space<vmem>>, %arg4: memref<8x4xbf16, #tpu.memory_space<vmem>>, %arg5: memref<16x1xf32, #tpu.memory_space<vmem>>, %arg6: memref<16x1xf32, #tpu.memory_space<vmem>>, %arg7: memref<8x1xf32, #tpu.memory_space<vmem>>, %arg8: memref<1x32x256xf32, #tpu.memory_space<vmem>>) attributes {dimension_semantics = [#tpu.dimension_semantics<parallel>], iteration_bounds = array<i64: 2>, scalar_prefetch = 0 : i64, scratch_operands = 0 : i64, tpu.core_type = #tpu.core_type<tc>, window_params = [{transform_indices = @transform_0, window_bounds = array<i64: 1, 4, 256>}, {pipeline_mode = #tpu.pipeline_mode<synchronous>, transform_indices = @transform_1, window_bounds = array<i64: 16, 4>}, {pipeline_mode = #tpu.pipeline_mode<synchronous>, transform_indices = @transform_2, window_bounds = array<i64: 25, 16, 8>}, {pipeline_mode = #tpu.pipeline_mode<synchronous>, transform_indices = @transform_3, window_bounds = array<i64: 8, 4>}, {pipeline_mode = #tpu.pipeline_mode<synchronous>, transform_indices = @transform_4, window_bounds = array<i64: 16, 1>}, {pipeline_mode = #tpu.pipeline_mode<synchronous>, transform_indices = @transform_5, window_bounds = array<i64: 16, 1>}, {pipeline_mode = #tpu.pipeline_mode<synchronous>, transform_indices = @transform_6, window_bounds = array<i64: 8, 1>}, {transform_indices = @transform_7, window_bounds = array<i64: 1, 32, 256>}]} {
    %c0 = arith.constant 0 : index
    %c0_0 = arith.constant 0 : index
    %c0_1 = arith.constant 0 : index
    %0 = vector.load %arg1[%c0, %c0_0, %c0_1] : memref<1x4x256xf32, #tpu.memory_space<vmem>>, vector<1x4x256xf32>
    %1 = vector.shape_cast %0 : vector<1x4x256xf32> to vector<4x256xf32>
    %2 = tpu.iota {dimensions = array<i32: 1>} : vector<1x256xi32>
    %c4_i32 = arith.constant 4 : i32
    %3 = vector.broadcast %c4_i32 : i32 to vector<1x256xi32>
    %4 = arith.shrsi %2, %3 : vector<1x256xi32>
    %c15_i32 = arith.constant 15 : i32
    %5 = vector.broadcast %c15_i32 : i32 to vector<1x256xi32>
    %6 = arith.andi %2, %5 : vector<1x256xi32>
    %c2_i32 = arith.constant 2 : i32
    %7 = vector.broadcast %c2_i32 : i32 to vector<1x256xi32>
    %8 = arith.cmpi sge, %4, %7 : vector<1x256xi32>
    %c18_i32 = arith.constant 18 : i32
    %9 = vector.broadcast %c18_i32 : i32 to vector<1x256xi32>
    %10 = arith.cmpi slt, %4, %9 : vector<1x256xi32>
    %11 = arith.andi %8, %10 : vector<1x256xi1>
    %c1_i32 = arith.constant 1 : i32
    %12 = vector.broadcast %c1_i32 : i32 to vector<1x256xi32>
    %13 = arith.cmpi sge, %4, %12 : vector<1x256xi32>
    %c17_i32 = arith.constant 17 : i32
    %14 = vector.broadcast %c17_i32 : i32 to vector<1x256xi32>
    %15 = arith.cmpi slt, %4, %14 : vector<1x256xi32>
    %16 = arith.andi %13, %15 : vector<1x256xi1>
    %c0_i32 = arith.constant 0 : i32
    %17 = vector.broadcast %c0_i32 : i32 to vector<1x256xi32>
    %18 = arith.cmpi sge, %4, %17 : vector<1x256xi32>
    %c16_i32 = arith.constant 16 : i32
    %19 = vector.broadcast %c16_i32 : i32 to vector<1x256xi32>
    %20 = arith.cmpi slt, %4, %19 : vector<1x256xi32>
    %21 = arith.andi %18, %20 : vector<1x256xi1>
    %c-1_i32 = arith.constant -1 : i32
    %22 = vector.broadcast %c-1_i32 : i32 to vector<1x256xi32>
    %23 = arith.cmpi sge, %4, %22 : vector<1x256xi32>
    %c15_i32_2 = arith.constant 15 : i32
    %24 = vector.broadcast %c15_i32_2 : i32 to vector<1x256xi32>
    %25 = arith.cmpi slt, %4, %24 : vector<1x256xi32>
    %26 = arith.andi %23, %25 : vector<1x256xi1>
    %c-2_i32 = arith.constant -2 : i32
    %27 = vector.broadcast %c-2_i32 : i32 to vector<1x256xi32>
    %28 = arith.cmpi sge, %4, %27 : vector<1x256xi32>
    %c14_i32 = arith.constant 14 : i32
    %29 = vector.broadcast %c14_i32 : i32 to vector<1x256xi32>
    %30 = arith.cmpi slt, %4, %29 : vector<1x256xi32>
    %31 = arith.andi %28, %30 : vector<1x256xi1>
    %c2_i32_3 = arith.constant 2 : i32
    %32 = vector.broadcast %c2_i32_3 : i32 to vector<1x256xi32>
    %33 = arith.cmpi sge, %6, %32 : vector<1x256xi32>
    %c18_i32_4 = arith.constant 18 : i32
    %34 = vector.broadcast %c18_i32_4 : i32 to vector<1x256xi32>
    %35 = arith.cmpi slt, %6, %34 : vector<1x256xi32>
    %36 = arith.andi %33, %35 : vector<1x256xi1>
    %c1_i32_5 = arith.constant 1 : i32
    %37 = vector.broadcast %c1_i32_5 : i32 to vector<1x256xi32>
    %38 = arith.cmpi sge, %6, %37 : vector<1x256xi32>
    %c17_i32_6 = arith.constant 17 : i32
    %39 = vector.broadcast %c17_i32_6 : i32 to vector<1x256xi32>
    %40 = arith.cmpi slt, %6, %39 : vector<1x256xi32>
    %41 = arith.andi %38, %40 : vector<1x256xi1>
    %c0_i32_7 = arith.constant 0 : i32
    %42 = vector.broadcast %c0_i32_7 : i32 to vector<1x256xi32>
    %43 = arith.cmpi sge, %6, %42 : vector<1x256xi32>
    %c16_i32_8 = arith.constant 16 : i32
    %44 = vector.broadcast %c16_i32_8 : i32 to vector<1x256xi32>
    %45 = arith.cmpi slt, %6, %44 : vector<1x256xi32>
    %46 = arith.andi %43, %45 : vector<1x256xi1>
    %c-1_i32_9 = arith.constant -1 : i32
    %47 = vector.broadcast %c-1_i32_9 : i32 to vector<1x256xi32>
    %48 = arith.cmpi sge, %6, %47 : vector<1x256xi32>
    %c15_i32_10 = arith.constant 15 : i32
    %49 = vector.broadcast %c15_i32_10 : i32 to vector<1x256xi32>
    %50 = arith.cmpi slt, %6, %49 : vector<1x256xi32>
    %51 = arith.andi %48, %50 : vector<1x256xi1>
    %c-2_i32_11 = arith.constant -2 : i32
    %52 = vector.broadcast %c-2_i32_11 : i32 to vector<1x256xi32>
    %53 = arith.cmpi sge, %6, %52 : vector<1x256xi32>
    %c14_i32_12 = arith.constant 14 : i32
    %54 = vector.broadcast %c14_i32_12 : i32 to vector<1x256xi32>
    %55 = arith.cmpi slt, %6, %54 : vector<1x256xi32>
    %56 = arith.andi %53, %55 : vector<1x256xi1>
    %57 = arith.andi %11, %36 : vector<1x256xi1>
    %58 = arith.extui %57 : vector<1x256xi1> to vector<1x256xi32>
    %59 = arith.sitofp %58 : vector<1x256xi32> to vector<1x256xf32>
    %60 = arith.andi %11, %41 : vector<1x256xi1>
    %61 = arith.extui %60 : vector<1x256xi1> to vector<1x256xi32>
    %62 = arith.sitofp %61 : vector<1x256xi32> to vector<1x256xf32>
    %63 = arith.andi %11, %46 : vector<1x256xi1>
    %64 = arith.extui %63 : vector<1x256xi1> to vector<1x256xi32>
    %65 = arith.sitofp %64 : vector<1x256xi32> to vector<1x256xf32>
    %66 = arith.andi %11, %51 : vector<1x256xi1>
    %67 = arith.extui %66 : vector<1x256xi1> to vector<1x256xi32>
    %68 = arith.sitofp %67 : vector<1x256xi32> to vector<1x256xf32>
    %69 = arith.andi %11, %56 : vector<1x256xi1>
    %70 = arith.extui %69 : vector<1x256xi1> to vector<1x256xi32>
    %71 = arith.sitofp %70 : vector<1x256xi32> to vector<1x256xf32>
    %72 = arith.andi %16, %36 : vector<1x256xi1>
    %73 = arith.extui %72 : vector<1x256xi1> to vector<1x256xi32>
    %74 = arith.sitofp %73 : vector<1x256xi32> to vector<1x256xf32>
    %75 = arith.andi %16, %41 : vector<1x256xi1>
    %76 = arith.extui %75 : vector<1x256xi1> to vector<1x256xi32>
    %77 = arith.sitofp %76 : vector<1x256xi32> to vector<1x256xf32>
    %78 = arith.andi %16, %46 : vector<1x256xi1>
    %79 = arith.extui %78 : vector<1x256xi1> to vector<1x256xi32>
    %80 = arith.sitofp %79 : vector<1x256xi32> to vector<1x256xf32>
    %81 = arith.andi %16, %51 : vector<1x256xi1>
    %82 = arith.extui %81 : vector<1x256xi1> to vector<1x256xi32>
    %83 = arith.sitofp %82 : vector<1x256xi32> to vector<1x256xf32>
    %84 = arith.andi %16, %56 : vector<1x256xi1>
    %85 = arith.extui %84 : vector<1x256xi1> to vector<1x256xi32>
    %86 = arith.sitofp %85 : vector<1x256xi32> to vector<1x256xf32>
    %87 = arith.andi %21, %36 : vector<1x256xi1>
    %88 = arith.extui %87 : vector<1x256xi1> to vector<1x256xi32>
    %89 = arith.sitofp %88 : vector<1x256xi32> to vector<1x256xf32>
    %90 = arith.andi %21, %41 : vector<1x256xi1>
    %91 = arith.extui %90 : vector<1x256xi1> to vector<1x256xi32>
    %92 = arith.sitofp %91 : vector<1x256xi32> to vector<1x256xf32>
    %93 = arith.andi %21, %51 : vector<1x256xi1>
    %94 = arith.extui %93 : vector<1x256xi1> to vector<1x256xi32>
    %95 = arith.sitofp %94 : vector<1x256xi32> to vector<1x256xf32>
    %96 = arith.andi %21, %56 : vector<1x256xi1>
    %97 = arith.extui %96 : vector<1x256xi1> to vector<1x256xi32>
    %98 = arith.sitofp %97 : vector<1x256xi32> to vector<1x256xf32>
    %99 = arith.andi %26, %36 : vector<1x256xi1>
    %100 = arith.extui %99 : vector<1x256xi1> to vector<1x256xi32>
    %101 = arith.sitofp %100 : vector<1x256xi32> to vector<1x256xf32>
    %102 = arith.andi %26, %41 : vector<1x256xi1>
    %103 = arith.extui %102 : vector<1x256xi1> to vector<1x256xi32>
    %104 = arith.sitofp %103 : vector<1x256xi32> to vector<1x256xf32>
    %105 = arith.andi %26, %46 : vector<1x256xi1>
    %106 = arith.extui %105 : vector<1x256xi1> to vector<1x256xi32>
    %107 = arith.sitofp %106 : vector<1x256xi32> to vector<1x256xf32>
    %108 = arith.andi %26, %51 : vector<1x256xi1>
    %109 = arith.extui %108 : vector<1x256xi1> to vector<1x256xi32>
    %110 = arith.sitofp %109 : vector<1x256xi32> to vector<1x256xf32>
    %111 = arith.andi %26, %56 : vector<1x256xi1>
    %112 = arith.extui %111 : vector<1x256xi1> to vector<1x256xi32>
    %113 = arith.sitofp %112 : vector<1x256xi32> to vector<1x256xf32>
    %114 = arith.andi %31, %36 : vector<1x256xi1>
    %115 = arith.extui %114 : vector<1x256xi1> to vector<1x256xi32>
    %116 = arith.sitofp %115 : vector<1x256xi32> to vector<1x256xf32>
    %117 = arith.andi %31, %41 : vector<1x256xi1>
    %118 = arith.extui %117 : vector<1x256xi1> to vector<1x256xi32>
    %119 = arith.sitofp %118 : vector<1x256xi32> to vector<1x256xf32>
    %120 = arith.andi %31, %46 : vector<1x256xi1>
    %121 = arith.extui %120 : vector<1x256xi1> to vector<1x256xi32>
    %122 = arith.sitofp %121 : vector<1x256xi32> to vector<1x256xf32>
    %123 = arith.andi %31, %51 : vector<1x256xi1>
    %124 = arith.extui %123 : vector<1x256xi1> to vector<1x256xi32>
    %125 = arith.sitofp %124 : vector<1x256xi32> to vector<1x256xf32>
    %126 = arith.andi %31, %56 : vector<1x256xi1>
    %127 = arith.extui %126 : vector<1x256xi1> to vector<1x256xi32>
    %128 = arith.sitofp %127 : vector<1x256xi32> to vector<1x256xf32>
    %c0_13 = arith.constant 0 : index
    %c0_14 = arith.constant 0 : index
    %129 = vector.load %arg2[%c0_13, %c0_14] : memref<16x4xbf16, #tpu.memory_space<vmem>>, vector<16x4xbf16>
    %130 = arith.truncf %1 : vector<4x256xf32> to vector<4x256xbf16>
    %cst = arith.constant dense<0.000000e+00> : vector<16x256xf32>
    %131 = tpu.matmul %129, %130, %cst {dimension_numbers = #tpu.dot_dimension_numbers<[1], [0], [0], [1], [0, 0, 1, 1], [], []>} : vector<16x4xbf16>, vector<4x256xbf16>, vector<16x256xf32> -> vector<16x256xf32>
    %c0_15 = arith.constant 0 : index
    %c0_16 = arith.constant 0 : index
    %132 = vector.load %arg5[%c0_15, %c0_16] : memref<16x1xf32, #tpu.memory_space<vmem>>, vector<16x1xf32>
    %133 = vector.broadcast %132 : vector<16x1xf32> to vector<16x256xf32>
    %134 = arith.addf %131, %133 : vector<16x256xf32>
    %cst_17 = arith.constant 0.000000e+00 : f32
    %135 = vector.broadcast %cst_17 : f32 to vector<16x256xf32>
    %136 = arith.maximumf %134, %135 : vector<16x256xf32>
    %137 = vector.extract_strided_slice %136 {offsets = [0, 0], sizes = [8, 256], strides = [1, 1]} : vector<16x256xf32> to vector<8x256xf32>
    %c0_18 = arith.constant 0 : index
    %c0_19 = arith.constant 0 : index
    %c0_20 = arith.constant 0 : index
    %138 = vector.load %arg8[%c0_18, %c0_19, %c0_20] : memref<1x32x256xf32, #tpu.memory_space<vmem>>, vector<1x8x256xf32>
    %139 = vector.shape_cast %138 : vector<1x8x256xf32> to vector<8x256xf32>
    %140 = vector.shape_cast %137 : vector<8x256xf32> to vector<1x8x256xf32>
    tpu.vector_store %arg8[%c0_18, %c0_19, %c0_20], %140 {strides = array<i32>} : memref<1x32x256xf32, #tpu.memory_space<vmem>>, vector<1x8x256xf32>,
    %141 = vector.extract_strided_slice %136 {offsets = [8, 0], sizes = [8, 256], strides = [1, 1]} : vector<16x256xf32> to vector<8x256xf32>
    %cst_21 = arith.constant 0.000000e+00 : f32
    %142 = vector.broadcast %cst_21 : f32 to vector<16x256xf32>
    %c34_i32 = arith.constant 34 : i32
    %143 = tpu.dynamic_rotate %141 by %c34_i32 dim 1 : vector<8x256xf32>, i32 -> vector<8x256xf32>
    %144 = vector.broadcast %59 : vector<1x256xf32> to vector<8x256xf32>
    %145 = arith.mulf %143, %144 : vector<8x256xf32>
    %c0_22 = arith.constant 0 : index
    %c0_23 = arith.constant 0 : index
    %c0_24 = arith.constant 0 : index
    %146 = vector.load %arg3[%c0_22, %c0_23, %c0_24] : memref<25x16x8xbf16, #tpu.memory_space<vmem>>, vector<1x16x8xbf16>
    %147 = vector.shape_cast %146 : vector<1x16x8xbf16> to vector<16x8xbf16>
    %148 = arith.truncf %145 : vector<8x256xf32> to vector<8x256xbf16>
    %cst_25 = arith.constant dense<0.000000e+00> : vector<16x256xf32>
    %149 = tpu.matmul %147, %148, %cst_25 {dimension_numbers = #tpu.dot_dimension_numbers<[1], [0], [0], [1], [0, 0, 1, 1], [], []>} : vector<16x8xbf16>, vector<8x256xbf16>, vector<16x256xf32> -> vector<16x256xf32>
    %150 = arith.addf %142, %149 : vector<16x256xf32>
    %c33_i32 = arith.constant 33 : i32
    %151 = tpu.dynamic_rotate %141 by %c33_i32 dim 1 : vector<8x256xf32>, i32 -> vector<8x256xf32>
    %152 = vector.broadcast %62 : vector<1x256xf32> to vector<8x256xf32>
    %153 = arith.mulf %151, %152 : vector<8x256xf32>
    %c1 = arith.constant 1 : index
    %c0_26 = arith.constant 0 : index
    %c0_27 = arith.constant 0 : index
    %154 = vector.load %arg3[%c1, %c0_26, %c0_27] : memref<25x16x8xbf16, #tpu.memory_space<vmem>>, vector<1x16x8xbf16>
    %155 = vector.shape_cast %154 : vector<1x16x8xbf16> to vector<16x8xbf16>
    %156 = arith.truncf %153 : vector<8x256xf32> to vector<8x256xbf16>
    %cst_28 = arith.constant dense<0.000000e+00> : vector<16x256xf32>
    %157 = tpu.matmul %155, %156, %cst_28 {dimension_numbers = #tpu.dot_dimension_numbers<[1], [0], [0], [1], [0, 0, 1, 1], [], []>} : vector<16x8xbf16>, vector<8x256xbf16>, vector<16x256xf32> -> vector<16x256xf32>
    %158 = arith.addf %150, %157 : vector<16x256xf32>
    %c32_i32 = arith.constant 32 : i32
    %159 = tpu.dynamic_rotate %141 by %c32_i32 dim 1 : vector<8x256xf32>, i32 -> vector<8x256xf32>
    %160 = vector.broadcast %65 : vector<1x256xf32> to vector<8x256xf32>
    %161 = arith.mulf %159, %160 : vector<8x256xf32>
    %c2 = arith.constant 2 : index
    %c0_29 = arith.constant 0 : index
    %c0_30 = arith.constant 0 : index
    %162 = vector.load %arg3[%c2, %c0_29, %c0_30] : memref<25x16x8xbf16, #tpu.memory_space<vmem>>, vector<1x16x8xbf16>
    %163 = vector.shape_cast %162 : vector<1x16x8xbf16> to vector<16x8xbf16>
    %164 = arith.truncf %161 : vector<8x256xf32> to vector<8x256xbf16>
    %cst_31 = arith.constant dense<0.000000e+00> : vector<16x256xf32>
    %165 = tpu.matmul %163, %164, %cst_31 {dimension_numbers = #tpu.dot_dimension_numbers<[1], [0], [0], [1], [0, 0, 1, 1], [], []>} : vector<16x8xbf16>, vector<8x256xbf16>, vector<16x256xf32> -> vector<16x256xf32>
    %166 = arith.addf %158, %165 : vector<16x256xf32>
    %c31_i32 = arith.constant 31 : i32
    %167 = tpu.dynamic_rotate %141 by %c31_i32 dim 1 : vector<8x256xf32>, i32 -> vector<8x256xf32>
    %168 = vector.broadcast %68 : vector<1x256xf32> to vector<8x256xf32>
    %169 = arith.mulf %167, %168 : vector<8x256xf32>
    %c3 = arith.constant 3 : index
    %c0_32 = arith.constant 0 : index
    %c0_33 = arith.constant 0 : index
    %170 = vector.load %arg3[%c3, %c0_32, %c0_33] : memref<25x16x8xbf16, #tpu.memory_space<vmem>>, vector<1x16x8xbf16>
    %171 = vector.shape_cast %170 : vector<1x16x8xbf16> to vector<16x8xbf16>
    %172 = arith.truncf %169 : vector<8x256xf32> to vector<8x256xbf16>
    %cst_34 = arith.constant dense<0.000000e+00> : vector<16x256xf32>
    %173 = tpu.matmul %171, %172, %cst_34 {dimension_numbers = #tpu.dot_dimension_numbers<[1], [0], [0], [1], [0, 0, 1, 1], [], []>} : vector<16x8xbf16>, vector<8x256xbf16>, vector<16x256xf32> -> vector<16x256xf32>
    %174 = arith.addf %166, %173 : vector<16x256xf32>
    %c30_i32 = arith.constant 30 : i32
    %175 = tpu.dynamic_rotate %141 by %c30_i32 dim 1 : vector<8x256xf32>, i32 -> vector<8x256xf32>
    %176 = vector.broadcast %71 : vector<1x256xf32> to vector<8x256xf32>
    %177 = arith.mulf %175, %176 : vector<8x256xf32>
    %c4 = arith.constant 4 : index
    %c0_35 = arith.constant 0 : index
    %c0_36 = arith.constant 0 : index
    %178 = vector.load %arg3[%c4, %c0_35, %c0_36] : memref<25x16x8xbf16, #tpu.memory_space<vmem>>, vector<1x16x8xbf16>
    %179 = vector.shape_cast %178 : vector<1x16x8xbf16> to vector<16x8xbf16>
    %180 = arith.truncf %177 : vector<8x256xf32> to vector<8x256xbf16>
    %cst_37 = arith.constant dense<0.000000e+00> : vector<16x256xf32>
    %181 = tpu.matmul %179, %180, %cst_37 {dimension_numbers = #tpu.dot_dimension_numbers<[1], [0], [0], [1], [0, 0, 1, 1], [], []>} : vector<16x8xbf16>, vector<8x256xbf16>, vector<16x256xf32> -> vector<16x256xf32>
    %182 = arith.addf %174, %181 : vector<16x256xf32>
    %c18_i32_38 = arith.constant 18 : i32
    %183 = tpu.dynamic_rotate %141 by %c18_i32_38 dim 1 : vector<8x256xf32>, i32 -> vector<8x256xf32>
    %184 = vector.broadcast %74 : vector<1x256xf32> to vector<8x256xf32>
    %185 = arith.mulf %183, %184 : vector<8x256xf32>
    %c5 = arith.constant 5 : index
    %c0_39 = arith.constant 0 : index
    %c0_40 = arith.constant 0 : index
    %186 = vector.load %arg3[%c5, %c0_39, %c0_40] : memref<25x16x8xbf16, #tpu.memory_space<vmem>>, vector<1x16x8xbf16>
    %187 = vector.shape_cast %186 : vector<1x16x8xbf16> to vector<16x8xbf16>
    %188 = arith.truncf %185 : vector<8x256xf32> to vector<8x256xbf16>
    %cst_41 = arith.constant dense<0.000000e+00> : vector<16x256xf32>
    %189 = tpu.matmul %187, %188, %cst_41 {dimension_numbers = #tpu.dot_dimension_numbers<[1], [0], [0], [1], [0, 0, 1, 1], [], []>} : vector<16x8xbf16>, vector<8x256xbf16>, vector<16x256xf32> -> vector<16x256xf32>
    %190 = arith.addf %182, %189 : vector<16x256xf32>
    %c17_i32_42 = arith.constant 17 : i32
    %191 = tpu.dynamic_rotate %141 by %c17_i32_42 dim 1 : vector<8x256xf32>, i32 -> vector<8x256xf32>
    %192 = vector.broadcast %77 : vector<1x256xf32> to vector<8x256xf32>
    %193 = arith.mulf %191, %192 : vector<8x256xf32>
    %c6 = arith.constant 6 : index
    %c0_43 = arith.constant 0 : index
    %c0_44 = arith.constant 0 : index
    %194 = vector.load %arg3[%c6, %c0_43, %c0_44] : memref<25x16x8xbf16, #tpu.memory_space<vmem>>, vector<1x16x8xbf16>
    %195 = vector.shape_cast %194 : vector<1x16x8xbf16> to vector<16x8xbf16>
    %196 = arith.truncf %193 : vector<8x256xf32> to vector<8x256xbf16>
    %cst_45 = arith.constant dense<0.000000e+00> : vector<16x256xf32>
    %197 = tpu.matmul %195, %196, %cst_45 {dimension_numbers = #tpu.dot_dimension_numbers<[1], [0], [0], [1], [0, 0, 1, 1], [], []>} : vector<16x8xbf16>, vector<8x256xbf16>, vector<16x256xf32> -> vector<16x256xf32>
    %198 = arith.addf %190, %197 : vector<16x256xf32>
    %c16_i32_46 = arith.constant 16 : i32
    %199 = tpu.dynamic_rotate %141 by %c16_i32_46 dim 1 : vector<8x256xf32>, i32 -> vector<8x256xf32>
    %200 = vector.broadcast %80 : vector<1x256xf32> to vector<8x256xf32>
    %201 = arith.mulf %199, %200 : vector<8x256xf32>
    %c7 = arith.constant 7 : index
    %c0_47 = arith.constant 0 : index
    %c0_48 = arith.constant 0 : index
    %202 = vector.load %arg3[%c7, %c0_47, %c0_48] : memref<25x16x8xbf16, #tpu.memory_space<vmem>>, vector<1x16x8xbf16>
    %203 = vector.shape_cast %202 : vector<1x16x8xbf16> to vector<16x8xbf16>
    %204 = arith.truncf %201 : vector<8x256xf32> to vector<8x256xbf16>
    %cst_49 = arith.constant dense<0.000000e+00> : vector<16x256xf32>
    %205 = tpu.matmul %203, %204, %cst_49 {dimension_numbers = #tpu.dot_dimension_numbers<[1], [0], [0], [1], [0, 0, 1, 1], [], []>} : vector<16x8xbf16>, vector<8x256xbf16>, vector<16x256xf32> -> vector<16x256xf32>
    %206 = arith.addf %198, %205 : vector<16x256xf32>
    %c15_i32_50 = arith.constant 15 : i32
    %207 = tpu.dynamic_rotate %141 by %c15_i32_50 dim 1 : vector<8x256xf32>, i32 -> vector<8x256xf32>
    %208 = vector.broadcast %83 : vector<1x256xf32> to vector<8x256xf32>
    %209 = arith.mulf %207, %208 : vector<8x256xf32>
    %c8 = arith.constant 8 : index
    %c0_51 = arith.constant 0 : index
    %c0_52 = arith.constant 0 : index
    %210 = vector.load %arg3[%c8, %c0_51, %c0_52] : memref<25x16x8xbf16, #tpu.memory_space<vmem>>, vector<1x16x8xbf16>
    %211 = vector.shape_cast %210 : vector<1x16x8xbf16> to vector<16x8xbf16>
    %212 = arith.truncf %209 : vector<8x256xf32> to vector<8x256xbf16>
    %cst_53 = arith.constant dense<0.000000e+00> : vector<16x256xf32>
    %213 = tpu.matmul %211, %212, %cst_53 {dimension_numbers = #tpu.dot_dimension_numbers<[1], [0], [0], [1], [0, 0, 1, 1], [], []>} : vector<16x8xbf16>, vector<8x256xbf16>, vector<16x256xf32> -> vector<16x256xf32>
    %214 = arith.addf %206, %213 : vector<16x256xf32>
    %c14_i32_54 = arith.constant 14 : i32
    %215 = tpu.dynamic_rotate %141 by %c14_i32_54 dim 1 : vector<8x256xf32>, i32 -> vector<8x256xf32>
    %216 = vector.broadcast %86 : vector<1x256xf32> to vector<8x256xf32>
    %217 = arith.mulf %215, %216 : vector<8x256xf32>
    %c9 = arith.constant 9 : index
    %c0_55 = arith.constant 0 : index
    %c0_56 = arith.constant 0 : index
    %218 = vector.load %arg3[%c9, %c0_55, %c0_56] : memref<25x16x8xbf16, #tpu.memory_space<vmem>>, vector<1x16x8xbf16>
    %219 = vector.shape_cast %218 : vector<1x16x8xbf16> to vector<16x8xbf16>
    %220 = arith.truncf %217 : vector<8x256xf32> to vector<8x256xbf16>
    %cst_57 = arith.constant dense<0.000000e+00> : vector<16x256xf32>
    %221 = tpu.matmul %219, %220, %cst_57 {dimension_numbers = #tpu.dot_dimension_numbers<[1], [0], [0], [1], [0, 0, 1, 1], [], []>} : vector<16x8xbf16>, vector<8x256xbf16>, vector<16x256xf32> -> vector<16x256xf32>
    %222 = arith.addf %214, %221 : vector<16x256xf32>
    %c2_i32_58 = arith.constant 2 : i32
    %223 = tpu.dynamic_rotate %141 by %c2_i32_58 dim 1 : vector<8x256xf32>, i32 -> vector<8x256xf32>
    %224 = vector.broadcast %89 : vector<1x256xf32> to vector<8x256xf32>
    %225 = arith.mulf %223, %224 : vector<8x256xf32>
    %c10 = arith.constant 10 : index
    %c0_59 = arith.constant 0 : index
    %c0_60 = arith.constant 0 : index
    %226 = vector.load %arg3[%c10, %c0_59, %c0_60] : memref<25x16x8xbf16, #tpu.memory_space<vmem>>, vector<1x16x8xbf16>
    %227 = vector.shape_cast %226 : vector<1x16x8xbf16> to vector<16x8xbf16>
    %228 = arith.truncf %225 : vector<8x256xf32> to vector<8x256xbf16>
    %cst_61 = arith.constant dense<0.000000e+00> : vector<16x256xf32>
    %229 = tpu.matmul %227, %228, %cst_61 {dimension_numbers = #tpu.dot_dimension_numbers<[1], [0], [0], [1], [0, 0, 1, 1], [], []>} : vector<16x8xbf16>, vector<8x256xbf16>, vector<16x256xf32> -> vector<16x256xf32>
    %230 = arith.addf %222, %229 : vector<16x256xf32>
    %c1_i32_62 = arith.constant 1 : i32
    %231 = tpu.dynamic_rotate %141 by %c1_i32_62 dim 1 : vector<8x256xf32>, i32 -> vector<8x256xf32>
    %232 = vector.broadcast %92 : vector<1x256xf32> to vector<8x256xf32>
    %233 = arith.mulf %231, %232 : vector<8x256xf32>
    %c11 = arith.constant 11 : index
    %c0_63 = arith.constant 0 : index
    %c0_64 = arith.constant 0 : index
    %234 = vector.load %arg3[%c11, %c0_63, %c0_64] : memref<25x16x8xbf16, #tpu.memory_space<vmem>>, vector<1x16x8xbf16>
    %235 = vector.shape_cast %234 : vector<1x16x8xbf16> to vector<16x8xbf16>
    %236 = arith.truncf %233 : vector<8x256xf32> to vector<8x256xbf16>
    %cst_65 = arith.constant dense<0.000000e+00> : vector<16x256xf32>
    %237 = tpu.matmul %235, %236, %cst_65 {dimension_numbers = #tpu.dot_dimension_numbers<[1], [0], [0], [1], [0, 0, 1, 1], [], []>} : vector<16x8xbf16>, vector<8x256xbf16>, vector<16x256xf32> -> vector<16x256xf32>
    %238 = arith.addf %230, %237 : vector<16x256xf32>
    %c12 = arith.constant 12 : index
    %c0_66 = arith.constant 0 : index
    %c0_67 = arith.constant 0 : index
    %239 = vector.load %arg3[%c12, %c0_66, %c0_67] : memref<25x16x8xbf16, #tpu.memory_space<vmem>>, vector<1x16x8xbf16>
    %240 = vector.shape_cast %239 : vector<1x16x8xbf16> to vector<16x8xbf16>
    %241 = arith.truncf %141 : vector<8x256xf32> to vector<8x256xbf16>
    %cst_68 = arith.constant dense<0.000000e+00> : vector<16x256xf32>
    %242 = tpu.matmul %240, %241, %cst_68 {dimension_numbers = #tpu.dot_dimension_numbers<[1], [0], [0], [1], [0, 0, 1, 1], [], []>} : vector<16x8xbf16>, vector<8x256xbf16>, vector<16x256xf32> -> vector<16x256xf32>
    %243 = arith.addf %238, %242 : vector<16x256xf32>
    %c255_i32 = arith.constant 255 : i32
    %244 = tpu.dynamic_rotate %141 by %c255_i32 dim 1 : vector<8x256xf32>, i32 -> vector<8x256xf32>
    %245 = vector.broadcast %95 : vector<1x256xf32> to vector<8x256xf32>
    %246 = arith.mulf %244, %245 : vector<8x256xf32>
    %c13 = arith.constant 13 : index
    %c0_69 = arith.constant 0 : index
    %c0_70 = arith.constant 0 : index
    %247 = vector.load %arg3[%c13, %c0_69, %c0_70] : memref<25x16x8xbf16, #tpu.memory_space<vmem>>, vector<1x16x8xbf16>
    %248 = vector.shape_cast %247 : vector<1x16x8xbf16> to vector<16x8xbf16>
    %249 = arith.truncf %246 : vector<8x256xf32> to vector<8x256xbf16>
    %cst_71 = arith.constant dense<0.000000e+00> : vector<16x256xf32>
    %250 = tpu.matmul %248, %249, %cst_71 {dimension_numbers = #tpu.dot_dimension_numbers<[1], [0], [0], [1], [0, 0, 1, 1], [], []>} : vector<16x8xbf16>, vector<8x256xbf16>, vector<16x256xf32> -> vector<16x256xf32>
    %251 = arith.addf %243, %250 : vector<16x256xf32>
    %c254_i32 = arith.constant 254 : i32
    %252 = tpu.dynamic_rotate %141 by %c254_i32 dim 1 : vector<8x256xf32>, i32 -> vector<8x256xf32>
    %253 = vector.broadcast %98 : vector<1x256xf32> to vector<8x256xf32>
    %254 = arith.mulf %252, %253 : vector<8x256xf32>
    %c14 = arith.constant 14 : index
    %c0_72 = arith.constant 0 : index
    %c0_73 = arith.constant 0 : index
    %255 = vector.load %arg3[%c14, %c0_72, %c0_73] : memref<25x16x8xbf16, #tpu.memory_space<vmem>>, vector<1x16x8xbf16>
    %256 = vector.shape_cast %255 : vector<1x16x8xbf16> to vector<16x8xbf16>
    %257 = arith.truncf %254 : vector<8x256xf32> to vector<8x256xbf16>
    %cst_74 = arith.constant dense<0.000000e+00> : vector<16x256xf32>
    %258 = tpu.matmul %256, %257, %cst_74 {dimension_numbers = #tpu.dot_dimension_numbers<[1], [0], [0], [1], [0, 0, 1, 1], [], []>} : vector<16x8xbf16>, vector<8x256xbf16>, vector<16x256xf32> -> vector<16x256xf32>
    %259 = arith.addf %251, %258 : vector<16x256xf32>
    %c242_i32 = arith.constant 242 : i32
    %260 = tpu.dynamic_rotate %141 by %c242_i32 dim 1 : vector<8x256xf32>, i32 -> vector<8x256xf32>
    %261 = vector.broadcast %101 : vector<1x256xf32> to vector<8x256xf32>
    %262 = arith.mulf %260, %261 : vector<8x256xf32>
    %c15 = arith.constant 15 : index
    %c0_75 = arith.constant 0 : index
    %c0_76 = arith.constant 0 : index
    %263 = vector.load %arg3[%c15, %c0_75, %c0_76] : memref<25x16x8xbf16, #tpu.memory_space<vmem>>, vector<1x16x8xbf16>
    %264 = vector.shape_cast %263 : vector<1x16x8xbf16> to vector<16x8xbf16>
    %265 = arith.truncf %262 : vector<8x256xf32> to vector<8x256xbf16>
    %cst_77 = arith.constant dense<0.000000e+00> : vector<16x256xf32>
    %266 = tpu.matmul %264, %265, %cst_77 {dimension_numbers = #tpu.dot_dimension_numbers<[1], [0], [0], [1], [0, 0, 1, 1], [], []>} : vector<16x8xbf16>, vector<8x256xbf16>, vector<16x256xf32> -> vector<16x256xf32>
    %267 = arith.addf %259, %266 : vector<16x256xf32>
    %c241_i32 = arith.constant 241 : i32
    %268 = tpu.dynamic_rotate %141 by %c241_i32 dim 1 : vector<8x256xf32>, i32 -> vector<8x256xf32>
    %269 = vector.broadcast %104 : vector<1x256xf32> to vector<8x256xf32>
    %270 = arith.mulf %268, %269 : vector<8x256xf32>
    %c16 = arith.constant 16 : index
    %c0_78 = arith.constant 0 : index
    %c0_79 = arith.constant 0 : index
    %271 = vector.load %arg3[%c16, %c0_78, %c0_79] : memref<25x16x8xbf16, #tpu.memory_space<vmem>>, vector<1x16x8xbf16>
    %272 = vector.shape_cast %271 : vector<1x16x8xbf16> to vector<16x8xbf16>
    %273 = arith.truncf %270 : vector<8x256xf32> to vector<8x256xbf16>
    %cst_80 = arith.constant dense<0.000000e+00> : vector<16x256xf32>
    %274 = tpu.matmul %272, %273, %cst_80 {dimension_numbers = #tpu.dot_dimension_numbers<[1], [0], [0], [1], [0, 0, 1, 1], [], []>} : vector<16x8xbf16>, vector<8x256xbf16>, vector<16x256xf32> -> vector<16x256xf32>
    %275 = arith.addf %267, %274 : vector<16x256xf32>
    %c240_i32 = arith.constant 240 : i32
    %276 = tpu.dynamic_rotate %141 by %c240_i32 dim 1 : vector<8x256xf32>, i32 -> vector<8x256xf32>
    %277 = vector.broadcast %107 : vector<1x256xf32> to vector<8x256xf32>
    %278 = arith.mulf %276, %277 : vector<8x256xf32>
    %c17 = arith.constant 17 : index
    %c0_81 = arith.constant 0 : index
    %c0_82 = arith.constant 0 : index
    %279 = vector.load %arg3[%c17, %c0_81, %c0_82] : memref<25x16x8xbf16, #tpu.memory_space<vmem>>, vector<1x16x8xbf16>
    %280 = vector.shape_cast %279 : vector<1x16x8xbf16> to vector<16x8xbf16>
    %281 = arith.truncf %278 : vector<8x256xf32> to vector<8x256xbf16>
    %cst_83 = arith.constant dense<0.000000e+00> : vector<16x256xf32>
    %282 = tpu.matmul %280, %281, %cst_83 {dimension_numbers = #tpu.dot_dimension_numbers<[1], [0], [0], [1], [0, 0, 1, 1], [], []>} : vector<16x8xbf16>, vector<8x256xbf16>, vector<16x256xf32> -> vector<16x256xf32>
    %283 = arith.addf %275, %282 : vector<16x256xf32>
    %c239_i32 = arith.constant 239 : i32
    %284 = tpu.dynamic_rotate %141 by %c239_i32 dim 1 : vector<8x256xf32>, i32 -> vector<8x256xf32>
    %285 = vector.broadcast %110 : vector<1x256xf32> to vector<8x256xf32>
    %286 = arith.mulf %284, %285 : vector<8x256xf32>
    %c18 = arith.constant 18 : index
    %c0_84 = arith.constant 0 : index
    %c0_85 = arith.constant 0 : index
    %287 = vector.load %arg3[%c18, %c0_84, %c0_85] : memref<25x16x8xbf16, #tpu.memory_space<vmem>>, vector<1x16x8xbf16>
    %288 = vector.shape_cast %287 : vector<1x16x8xbf16> to vector<16x8xbf16>
    %289 = arith.truncf %286 : vector<8x256xf32> to vector<8x256xbf16>
    %cst_86 = arith.constant dense<0.000000e+00> : vector<16x256xf32>
    %290 = tpu.matmul %288, %289, %cst_86 {dimension_numbers = #tpu.dot_dimension_numbers<[1], [0], [0], [1], [0, 0, 1, 1], [], []>} : vector<16x8xbf16>, vector<8x256xbf16>, vector<16x256xf32> -> vector<16x256xf32>
    %291 = arith.addf %283, %290 : vector<16x256xf32>
    %c238_i32 = arith.constant 238 : i32
    %292 = tpu.dynamic_rotate %141 by %c238_i32 dim 1 : vector<8x256xf32>, i32 -> vector<8x256xf32>
    %293 = vector.broadcast %113 : vector<1x256xf32> to vector<8x256xf32>
    %294 = arith.mulf %292, %293 : vector<8x256xf32>
    %c19 = arith.constant 19 : index
    %c0_87 = arith.constant 0 : index
    %c0_88 = arith.constant 0 : index
    %295 = vector.load %arg3[%c19, %c0_87, %c0_88] : memref<25x16x8xbf16, #tpu.memory_space<vmem>>, vector<1x16x8xbf16>
    %296 = vector.shape_cast %295 : vector<1x16x8xbf16> to vector<16x8xbf16>
    %297 = arith.truncf %294 : vector<8x256xf32> to vector<8x256xbf16>
    %cst_89 = arith.constant dense<0.000000e+00> : vector<16x256xf32>
    %298 = tpu.matmul %296, %297, %cst_89 {dimension_numbers = #tpu.dot_dimension_numbers<[1], [0], [0], [1], [0, 0, 1, 1], [], []>} : vector<16x8xbf16>, vector<8x256xbf16>, vector<16x256xf32> -> vector<16x256xf32>
    %299 = arith.addf %291, %298 : vector<16x256xf32>
    %c226_i32 = arith.constant 226 : i32
    %300 = tpu.dynamic_rotate %141 by %c226_i32 dim 1 : vector<8x256xf32>, i32 -> vector<8x256xf32>
    %301 = vector.broadcast %116 : vector<1x256xf32> to vector<8x256xf32>
    %302 = arith.mulf %300, %301 : vector<8x256xf32>
    %c20 = arith.constant 20 : index
    %c0_90 = arith.constant 0 : index
    %c0_91 = arith.constant 0 : index
    %303 = vector.load %arg3[%c20, %c0_90, %c0_91] : memref<25x16x8xbf16, #tpu.memory_space<vmem>>, vector<1x16x8xbf16>
    %304 = vector.shape_cast %303 : vector<1x16x8xbf16> to vector<16x8xbf16>
    %305 = arith.truncf %302 : vector<8x256xf32> to vector<8x256xbf16>
    %cst_92 = arith.constant dense<0.000000e+00> : vector<16x256xf32>
    %306 = tpu.matmul %304, %305, %cst_92 {dimension_numbers = #tpu.dot_dimension_numbers<[1], [0], [0], [1], [0, 0, 1, 1], [], []>} : vector<16x8xbf16>, vector<8x256xbf16>, vector<16x256xf32> -> vector<16x256xf32>
    %307 = arith.addf %299, %306 : vector<16x256xf32>
    %c225_i32 = arith.constant 225 : i32
    %308 = tpu.dynamic_rotate %141 by %c225_i32 dim 1 : vector<8x256xf32>, i32 -> vector<8x256xf32>
    %309 = vector.broadcast %119 : vector<1x256xf32> to vector<8x256xf32>
    %310 = arith.mulf %308, %309 : vector<8x256xf32>
    %c21 = arith.constant 21 : index
    %c0_93 = arith.constant 0 : index
    %c0_94 = arith.constant 0 : index
    %311 = vector.load %arg3[%c21, %c0_93, %c0_94] : memref<25x16x8xbf16, #tpu.memory_space<vmem>>, vector<1x16x8xbf16>
    %312 = vector.shape_cast %311 : vector<1x16x8xbf16> to vector<16x8xbf16>
    %313 = arith.truncf %310 : vector<8x256xf32> to vector<8x256xbf16>
    %cst_95 = arith.constant dense<0.000000e+00> : vector<16x256xf32>
    %314 = tpu.matmul %312, %313, %cst_95 {dimension_numbers = #tpu.dot_dimension_numbers<[1], [0], [0], [1], [0, 0, 1, 1], [], []>} : vector<16x8xbf16>, vector<8x256xbf16>, vector<16x256xf32> -> vector<16x256xf32>
    %315 = arith.addf %307, %314 : vector<16x256xf32>
    %c224_i32 = arith.constant 224 : i32
    %316 = tpu.dynamic_rotate %141 by %c224_i32 dim 1 : vector<8x256xf32>, i32 -> vector<8x256xf32>
    %317 = vector.broadcast %122 : vector<1x256xf32> to vector<8x256xf32>
    %318 = arith.mulf %316, %317 : vector<8x256xf32>
    %c22 = arith.constant 22 : index
    %c0_96 = arith.constant 0 : index
    %c0_97 = arith.constant 0 : index
    %319 = vector.load %arg3[%c22, %c0_96, %c0_97] : memref<25x16x8xbf16, #tpu.memory_space<vmem>>, vector<1x16x8xbf16>
    %320 = vector.shape_cast %319 : vector<1x16x8xbf16> to vector<16x8xbf16>
    %321 = arith.truncf %318 : vector<8x256xf32> to vector<8x256xbf16>
    %cst_98 = arith.constant dense<0.000000e+00> : vector<16x256xf32>
    %322 = tpu.matmul %320, %321, %cst_98 {dimension_numbers = #tpu.dot_dimension_numbers<[1], [0], [0], [1], [0, 0, 1, 1], [], []>} : vector<16x8xbf16>, vector<8x256xbf16>, vector<16x256xf32> -> vector<16x256xf32>
    %323 = arith.addf %315, %322 : vector<16x256xf32>
    %c223_i32 = arith.constant 223 : i32
    %324 = tpu.dynamic_rotate %141 by %c223_i32 dim 1 : vector<8x256xf32>, i32 -> vector<8x256xf32>
    %325 = vector.broadcast %125 : vector<1x256xf32> to vector<8x256xf32>
    %326 = arith.mulf %324, %325 : vector<8x256xf32>
    %c23 = arith.constant 23 : index
    %c0_99 = arith.constant 0 : index
    %c0_100 = arith.constant 0 : index
    %327 = vector.load %arg3[%c23, %c0_99, %c0_100] : memref<25x16x8xbf16, #tpu.memory_space<vmem>>, vector<1x16x8xbf16>
    %328 = vector.shape_cast %327 : vector<1x16x8xbf16> to vector<16x8xbf16>
    %329 = arith.truncf %326 : vector<8x256xf32> to vector<8x256xbf16>
    %cst_101 = arith.constant dense<0.000000e+00> : vector<16x256xf32>
    %330 = tpu.matmul %328, %329, %cst_101 {dimension_numbers = #tpu.dot_dimension_numbers<[1], [0], [0], [1], [0, 0, 1, 1], [], []>} : vector<16x8xbf16>, vector<8x256xbf16>, vector<16x256xf32> -> vector<16x256xf32>
    %331 = arith.addf %323, %330 : vector<16x256xf32>
    %c222_i32 = arith.constant 222 : i32
    %332 = tpu.dynamic_rotate %141 by %c222_i32 dim 1 : vector<8x256xf32>, i32 -> vector<8x256xf32>
    %333 = vector.broadcast %128 : vector<1x256xf32> to vector<8x256xf32>
    %334 = arith.mulf %332, %333 : vector<8x256xf32>
    %c24 = arith.constant 24 : index
    %c0_102 = arith.constant 0 : index
    %c0_103 = arith.constant 0 : index
    %335 = vector.load %arg3[%c24, %c0_102, %c0_103] : memref<25x16x8xbf16, #tpu.memory_space<vmem>>, vector<1x16x8xbf16>
    %336 = vector.shape_cast %335 : vector<1x16x8xbf16> to vector<16x8xbf16>
    %337 = arith.truncf %334 : vector<8x256xf32> to vector<8x256xbf16>
    %cst_104 = arith.constant dense<0.000000e+00> : vector<16x256xf32>
    %338 = tpu.matmul %336, %337, %cst_104 {dimension_numbers = #tpu.dot_dimension_numbers<[1], [0], [0], [1], [0, 0, 1, 1], [], []>} : vector<16x8xbf16>, vector<8x256xbf16>, vector<16x256xf32> -> vector<16x256xf32>
    %339 = arith.addf %331, %338 : vector<16x256xf32>
    %c0_105 = arith.constant 0 : index
    %c0_106 = arith.constant 0 : index
    %340 = vector.load %arg6[%c0_105, %c0_106] : memref<16x1xf32, #tpu.memory_space<vmem>>, vector<16x1xf32>
    %341 = vector.broadcast %340 : vector<16x1xf32> to vector<16x256xf32>
    %342 = arith.addf %339, %341 : vector<16x256xf32>
    %cst_107 = arith.constant 0.000000e+00 : f32
    %343 = vector.broadcast %cst_107 : f32 to vector<16x256xf32>
    %344 = arith.maximumf %342, %343 : vector<16x256xf32>
    %c0_108 = arith.constant 0 : index
    %c8_109 = arith.constant 8 : index
    %c0_110 = arith.constant 0 : index
    %345 = vector.load %arg8[%c0_108, %c8_109, %c0_110] : memref<1x32x256xf32, #tpu.memory_space<vmem>>, vector<1x16x256xf32>
    %346 = vector.shape_cast %345 : vector<1x16x256xf32> to vector<16x256xf32>
    %347 = vector.shape_cast %344 : vector<16x256xf32> to vector<1x16x256xf32>
    tpu.vector_store %arg8[%c0_108, %c8_109, %c0_110], %347 {strides = array<i32>} : memref<1x32x256xf32, #tpu.memory_space<vmem>>, vector<1x16x256xf32>,
    %c1_i32_111 = arith.constant 1 : i32
    %348 = tpu.dynamic_rotate %1 by %c1_i32_111 dim 1 : vector<4x256xf32>, i32 -> vector<4x256xf32>
    %cst_112 = arith.constant 0xFF800000 : f32
    %349 = vector.shape_cast %41 : vector<1x256xi1> to vector<1x256xi1>
    %350 = vector.broadcast %349 : vector<1x256xi1> to vector<4x256xi1>
    %351 = vector.broadcast %cst_112 : f32 to vector<4x256xf32>
    %352 = arith.select %350, %348, %351 : vector<4x256xi1>, vector<4x256xf32>
    %353 = arith.maximumf %1, %352 : vector<4x256xf32>
    %c255_i32_113 = arith.constant 255 : i32
    %354 = tpu.dynamic_rotate %1 by %c255_i32_113 dim 1 : vector<4x256xf32>, i32 -> vector<4x256xf32>
    %cst_114 = arith.constant 0xFF800000 : f32
    %355 = vector.shape_cast %51 : vector<1x256xi1> to vector<1x256xi1>
    %356 = vector.broadcast %355 : vector<1x256xi1> to vector<4x256xi1>
    %357 = vector.broadcast %cst_114 : f32 to vector<4x256xf32>
    %358 = arith.select %356, %354, %357 : vector<4x256xi1>, vector<4x256xf32>
    %359 = arith.maximumf %353, %358 : vector<4x256xf32>
    %c16_i32_115 = arith.constant 16 : i32
    %360 = tpu.dynamic_rotate %359 by %c16_i32_115 dim 1 : vector<4x256xf32>, i32 -> vector<4x256xf32>
    %cst_116 = arith.constant 0xFF800000 : f32
    %361 = vector.shape_cast %16 : vector<1x256xi1> to vector<1x256xi1>
    %362 = vector.broadcast %361 : vector<1x256xi1> to vector<4x256xi1>
    %363 = vector.broadcast %cst_116 : f32 to vector<4x256xf32>
    %364 = arith.select %362, %360, %363 : vector<4x256xi1>, vector<4x256xf32>
    %365 = arith.maximumf %359, %364 : vector<4x256xf32>
    %c240_i32_117 = arith.constant 240 : i32
    %366 = tpu.dynamic_rotate %359 by %c240_i32_117 dim 1 : vector<4x256xf32>, i32 -> vector<4x256xf32>
    %cst_118 = arith.constant 0xFF800000 : f32
    %367 = vector.shape_cast %26 : vector<1x256xi1> to vector<1x256xi1>
    %368 = vector.broadcast %367 : vector<1x256xi1> to vector<4x256xi1>
    %369 = vector.broadcast %cst_118 : f32 to vector<4x256xf32>
    %370 = arith.select %368, %366, %369 : vector<4x256xi1>, vector<4x256xf32>
    %371 = arith.maximumf %365, %370 : vector<4x256xf32>
    %c0_119 = arith.constant 0 : index
    %c0_120 = arith.constant 0 : index
    %372 = vector.load %arg4[%c0_119, %c0_120] : memref<8x4xbf16, #tpu.memory_space<vmem>>, vector<8x4xbf16>
    %373 = arith.truncf %371 : vector<4x256xf32> to vector<4x256xbf16>
    %cst_121 = arith.constant dense<0.000000e+00> : vector<8x256xf32>
    %374 = tpu.matmul %372, %373, %cst_121 {dimension_numbers = #tpu.dot_dimension_numbers<[1], [0], [0], [1], [0, 0, 1, 1], [], []>} : vector<8x4xbf16>, vector<4x256xbf16>, vector<8x256xf32> -> vector<8x256xf32>
    %c0_122 = arith.constant 0 : index
    %c0_123 = arith.constant 0 : index
    %375 = vector.load %arg7[%c0_122, %c0_123] : memref<8x1xf32, #tpu.memory_space<vmem>>, vector<8x1xf32>
    %376 = vector.broadcast %375 : vector<8x1xf32> to vector<8x256xf32>
    %377 = arith.addf %374, %376 : vector<8x256xf32>
    %cst_124 = arith.constant 0.000000e+00 : f32
    %378 = vector.broadcast %cst_124 : f32 to vector<8x256xf32>
    %379 = arith.maximumf %377, %378 : vector<8x256xf32>
    %c0_125 = arith.constant 0 : index
    %c24_126 = arith.constant 24 : index
    %c0_127 = arith.constant 0 : index
    %380 = vector.load %arg8[%c0_125, %c24_126, %c0_127] : memref<1x32x256xf32, #tpu.memory_space<vmem>>, vector<1x8x256xf32>
    %381 = vector.shape_cast %380 : vector<1x8x256xf32> to vector<8x256xf32>
    %382 = vector.shape_cast %379 : vector<8x256xf32> to vector<1x8x256xf32>
    tpu.vector_store %arg8[%c0_125, %c24_126, %c0_127], %382 {strides = array<i32>} : memref<1x32x256xf32, #tpu.memory_space<vmem>>, vector<1x8x256xf32>,
    return
  }
  func.func @transform_0(%arg0: i32) -> (i32, i32, i32) {
    %c0_i32 = arith.constant 0 : i32
    %c0_i32_0 = arith.constant 0 : i32
    %c0_i32_1 = arith.constant 0 : i32
    return %arg0, %c0_i32, %c0_i32_0 : i32, i32, i32
  }
  func.func @transform_1(%arg0: i32) -> (i32, i32) {
    %c0_i32 = arith.constant 0 : i32
    %c0_i32_0 = arith.constant 0 : i32
    %c0_i32_1 = arith.constant 0 : i32
    return %c0_i32, %c0_i32_0 : i32, i32
  }
  func.func @transform_2(%arg0: i32) -> (i32, i32, i32) {
    %c0_i32 = arith.constant 0 : i32
    %c0_i32_0 = arith.constant 0 : i32
    %c0_i32_1 = arith.constant 0 : i32
    %c0_i32_2 = arith.constant 0 : i32
    return %c0_i32, %c0_i32_0, %c0_i32_1 : i32, i32, i32
  }
  func.func @transform_3(%arg0: i32) -> (i32, i32) {
    %c0_i32 = arith.constant 0 : i32
    %c0_i32_0 = arith.constant 0 : i32
    %c0_i32_1 = arith.constant 0 : i32
    return %c0_i32, %c0_i32_0 : i32, i32
  }
  func.func @transform_4(%arg0: i32) -> (i32, i32) {
    %c0_i32 = arith.constant 0 : i32
    %c0_i32_0 = arith.constant 0 : i32
    %c0_i32_1 = arith.constant 0 : i32
    return %c0_i32, %c0_i32_0 : i32, i32
  }
  func.func @transform_5(%arg0: i32) -> (i32, i32) {
    %c0_i32 = arith.constant 0 : i32
    %c0_i32_0 = arith.constant 0 : i32
    %c0_i32_1 = arith.constant 0 : i32
    return %c0_i32, %c0_i32_0 : i32, i32
  }
  func.func @transform_6(%arg0: i32) -> (i32, i32) {
    %c0_i32 = arith.constant 0 : i32
    %c0_i32_0 = arith.constant 0 : i32
    %c0_i32_1 = arith.constant 0 : i32
    return %c0_i32, %c0_i32_0 : i32, i32
  }
  func.func @transform_7(%arg0: i32) -> (i32, i32, i32) {
    %c0_i32 = arith.constant 0 : i32
    %c0_i32_0 = arith.constant 0 : i32
    %c0_i32_1 = arith.constant 0 : i32
    return %arg0, %c0_i32, %c0_i32_0 : i32, i32, i32
  }
}

</mosaic_0001>

<bundles_post_ra>
// kernel: reduc_inception_forward.1
= control target key start
LH: loop header
LB: loop body
LE: loop exit
PB: predicated region body
PF: predicated region fallthrough
CT: control target
= control target key end

     0   :  { %s2977_s24 = smov 0   ;;  %s3937_s0 = inlined_call_operand.vmem [shape: f32[2,4,256], index: 0, kind: input, shape index: {}]   ;;  %s3938_s1 = inlined_call_operand.vmem [shape: bf16[16,4], index: 1, kind: input, shape index: {}]   ;;  %s3939_s2 = inlined_call_operand.vmem [shape: bf16[25,16,8], index: 2, kind: input, shape index: {}]   ;;  %s3940_s3 = inlined_call_operand.vmem [shape: bf16[8,4], index: 3, kind: input, shape index: {}]   ;;  %s3941_s4 = inlined_call_operand.vmem [shape: f32[16,1], index: 4, kind: input, shape index: {}]   ;;  %s3942_s5 = inlined_call_operand.vmem [shape: f32[16,1], index: 5, kind: input, shape index: {}]   ;;  %s3943_s6 = inlined_call_operand.vmem [shape: f32[8,1], index: 6, kind: input, shape index: {}]   ;;  %s3944_s7 = inlined_call_operand.vmem [shape: f32[2,32,256], index: 7, kind: output, shape index: {}]  }
   0x1 LB: > { %s2651_s25 = sadd.s32 4294967295, %s2909_s24   ;;  %p2655_p0 = scmp.ge.s32.totalorder %s2909_s24, 1  ;;  %s2909_s24 = sphi %s2977_s24, %s17_s24  }
   0x2   : > { %p237_p1 = scmp.lt.s32.totalorder %s2909_s24, 3 }
   0x4   : > { %p238_p2 = pnand %p2655_p0, %p237_p1 }
   0x5   : > { %p269_p3 = scmp.lt.s32.totalorder (!%p238_p2), %s2651_s25, 1  ;;  %s2912_s11 = smov (!%p238_p2), 34  }
   0x6   : > { %241 = sbr.rel (%p238_p2) target bundleno = 764 (0x2fc), region = 48  ;;  %s2913_s12 = smov (!%p238_p2), 33  }
   0x7   : > { %s2914_s13 = smov (!%p238_p2), 32   ;;  %s2915_s14 = smov (!%p238_p2), 1  }
   0x8   : > { %s2916_s15 = smov (!%p238_p2), 127   ;;  %s2917_s16 = smov (!%p238_p2), 31  }
   0x9   : > { %s2918_s17 = smov (!%p238_p2), 30   ;;  %s2919_s18 = smov (!%p238_p2), 18  }
   0xa   : > { %s2920_s19 = smov (!%p238_p2), 17   ;;  %s2921_s20 = smov (!%p238_p2), 16  }
   0xb   : > { %v2911_v0 = vmov 0   ;;  %v500_v1 = vld [vmem:[%s3941_s4 + $0x8] sm:$0xff]  ;;  %s4066_s25 = smov (!%p269_p3, %s2651_s25), 1  ;;  %vm3946_vm0 = vcmask 1041408   ;;  %v2877_v7 = vld [vmem:[%s3938_s1] sm:$0xff]   ;;  %vm3945_vm1 = vcmask 31744   ;;  %v281_v17 = vlaneseq }
   0xc   : > { %559 = vmatprep.mubr.bf16.mxu0 %v2911_v0  ;;  %2874 = vset.pattern.permute.xlu0 %v2911_v0  ;;  %s2838_s28 = sshll.u32 %s4066_s25, 3  ;;  %s2922_s21 = smov 15   ;;  %v2935_v30 = vmov 0.0   ;;  %v2878_v51 = vld [vmem:[%s3939_s2 + $0x8] sm:$0xff]   ;;  %v2880_v27 = vld [vmem:[%s3939_s2 + $0x10] sm:$0xff]  }
   0xd   : > { %508 = vperm.xlu0 %2874, %v500_v1   ;;  %651 = vmatprep.mubr.bf16.mxu1 %v2911_v0  ;;  %s273_s8 = scalar_lea.vmem %s3937_s0, %s2838_s28  ;;  %s2923_s22 = smov 14   ;;  %v3073_v18 = vand.u32 127, %v281_v17 }
   0xe   : > { %2875 = vset.pattern.permute.xlu1 %v2911_v0  ;;  %v2998_v2 = vld [vmem:[%s273_s8] sm:$0xff]  ;;  %s2924_s23 = smov 2   ;;  %s2925_s26 = smov 126  }
   0xf   : > { %v495_v3 = vcombine.high %v2998_v2, %v2998_v2  ;;  %v497_v4 = vpack.c.bf16 %v2998_v2, %v2998_v2  ;;  %s2926_s27 = smov 114   ;;  %s2927_s28 = smov 113   ;;  %v283_v19 = vadd.s32 128, %v3073_v18  ;;  %v3077_v20 = vshra.s32 %v3073_v18, 4 }
  0x10   : > { %s2928_s29 = smov 112   ;;  %s2929_s30 = smov 111   ;;  %v3082_v22 = vand.u32 15, %v3073_v18  ;;  %vm593_vm14 = vcmp.lt.s32.totalorder %v3073_v18, 33 }
  0x11   : > { %v498_v5 = vpack.c.bf16 %v495_v3, %v495_v3  ;;  %v522_v6 = vsel %vm3946_vm0, %v497_v4, 0  ;;  %s2930_s8 = smov 110   ;;  %s2931_s9 = smov 98   ;;  %v3079_v21 = vshra.s32 %v283_v19, 4  ;;  %vm288_vm2 = vcmp.ge.s32.totalorder %v3077_v20, 2 }
  0x12   : > { %s2932_s10 = smov 97   ;;  %vm290_vm3 = vcmp.lt.s32.totalorder %v3077_v20, 18  ;;  %v3086_v23 = vand.u32 15, %v283_v19  ;;  %vm3949_vm7 = vcmp.ge.s32.totalorder %v3082_v22, 1  ;;  %vm3958_vm11 = vcmp.ge.s32.totalorder %v3082_v22, 2 }
  0x13   : > { %2709 = vmatprep.subr.msk.bf16.mxu0 %vm3946_vm0, %v498_v5  ;;  %vm289_vm4 = vcmp.ge.s32.totalorder %v3079_v21, 2  ;;  %vm291_vm5 = vcmp.lt.s32.totalorder %v3079_v21, 18  ;;  %vm3090_vm6 = vmand %vm288_vm2, %vm290_vm3  ;;  %vm580_vm3 = vcmp.lt.s32.totalorder %v3073_v18, 34 }
  0x14   : > { %542 = vmatpush1.bf16.msra.mxu0 %v522_v6  ;;  %vm3095_vm8 = vmand %vm289_vm4, %vm291_vm5  ;;  %vm3948_vm9 = vcmp.ge.s32.totalorder %v3086_v23, 1  ;;  %vm3953_vm13 = vcmp.ge.s32.totalorder %v3086_v23, 2  ;;  %vm612_vm4 = vcmask 1043456   ;;  %vm3947_vm5 = vcmp.lt.s32.totalorder %v3082_v22, 15 }
  0x15   : > { %vm354_vm10 = vmand %vm3090_vm6, %vm3949_vm7  ;;  %v2664_v47 = vsel %vm3090_vm6, 1.0, %v2935_v30  ;;  %v2665_v52 = vsel %vm3095_vm8, 1.0, %v2935_v30  ;;  %vm345_vm0 = vcmp.lt.s32.totalorder %v3086_v23, 14  ;;  %vm296_vm7 = vcmp.lt.s32.totalorder %v3077_v20, 17 }
  0x16   : > { %vm355_vm12 = vmand %vm3095_vm8, %vm3948_vm9  ;;  %v2662_v31 = vsel %vm354_vm10, 1.0, %v2935_v30  ;;  %vm3950_vm10 = vcmp.lt.s32.totalorder %v3086_v23, 15  ;;  %vm295_vm9 = vcmp.ge.s32.totalorder %v3079_v21, 1 }
  0x17   : > { %2710 = vmatmul.mubr.msk.bf16.vlgmr.msra.gmra.mxu0 %vm3945_vm1, %v2877_v7  ;;  %vm348_vm15 = vmand %vm3090_vm6, %vm3958_vm11  ;;  %v2663_v32 = vsel %vm355_vm12, 1.0, %v2935_v30  ;;  %vm723_vm12 = vcmp.lt.s32.totalorder %v3073_v18, 32 }
  0x18   : > { %708 = vmatprep.mubr.bf16.mxu0 %v2911_v0  ;;  %vm349_vm2 = vmand %vm3095_vm8, %vm3953_vm13  ;;  %v2660_v39 = vsel %vm348_vm15, 1.0, %v2935_v30 }
  0x19   : > { %v2661_v40 = vsel %vm349_vm2, 1.0, %v2935_v30  ;;  %vm3146_vm15 = vmand %vm3090_vm6, %vm3947_vm5  ;;  %vm798_vm2 = vcmp.lt.s32.totalorder %v3073_v18, 31  ;;  %vm294_vm5 = vcmp.ge.s32.totalorder %v3077_v20, 1 }
  0x1a   : > { %vm3156_vm1 = vmand %vm3095_vm8, %vm3950_vm10  ;;  %v2666_v4 = vsel %vm3146_vm15, 1.0, %v2935_v30 }
  0x1b   : > { %v2667_v5 = vsel %vm3156_vm1, 1.0, %v2935_v30  ;;  %vm3202_vm15 = vmand %vm294_vm5, %vm296_vm7  ;;  %vm873_vm7 = vcmp.lt.s32.totalorder %v3073_v18, 30  ;;  %vm3952_vm5 = vcmp.lt.s32.totalorder %v3073_v18, 1 }
  0x88   : > { %v509_v10 = vpop.permute.xlu0 %508 }
  0xd7   : > { %v3011_v8 = vpop.f32.mrf.mxu0 }
  0xd9   : > { %v3013_v9 = vpop.f32.mrf.mxu0 }
  0xdb   : > { %v565_v11 = vpop.f32.mrf.mxu0 }
  0xdc   : > { %v566_v12 = vadd.f32 %v565_v11, %v509_v10 }
  0xdd   : > { %v567_v14 = vpop.f32.mrf.mxu0 }
  0xde   : > { %v3015_v13 = vmax.f32 %v566_v12, 0.0  ;;  %v568_v15 = vadd.f32 %v567_v14, %v509_v10 }
  0xe0   : > { %576 = vrot.lane.b32.xlu1 %v3015_v13, %s2912_s11  ;;  %589 = vrot.lane.b32.xlu0 %v3015_v13, %s2913_s12  ;;  %v3021_v16 = vmax.f32 %v568_v15, 0.0 }
  0xe4   : > { %719 = vrot.lane.b32.xlu1 %v3015_v13, %s2914_s13  ;;  %2461 = vrot.lane.b32.xlu0 %v495_v3, %s2915_s14 }
  0xe8   : > { %591 = vrot.lane.b32.xlu1 %v3021_v16, %s2913_s12  ;;  %2478 = vrot.lane.b32.xlu0 %v495_v3, %s2916_s15  ;;  %s2934_s12 = smov 95   ;;  %v2879_v3 = vld [vmem:[%s3939_s2] sm:$0xff]  }
  0xec   : > { %794 = vrot.lane.b32.xlu1 %v3015_v13, %s2917_s16  ;;  %578 = vrot.lane.b32.xlu0 %v3021_v16, %s2912_s11  ;;  %s2933_s11 = smov 96  }
  0xf0   : > { %869 = vrot.lane.b32.xlu1 %v3015_v13, %s2918_s17  ;;  %721 = vrot.lane.b32.xlu0 %v3021_v16, %s2914_s13 }
  0xf4   : > { %944 = vrot.lane.b32.xlu1 %v3015_v13, %s2919_s18  ;;  %796 = vrot.lane.b32.xlu0 %v3021_v16, %s2917_s16 }
  0xf8   : > { %1019 = vrot.lane.b32.xlu1 %v3015_v13, %s2920_s19  ;;  %871 = vrot.lane.b32.xlu0 %v3021_v16, %s2918_s17 }
  0xfc   : > { %2459 = vrot.lane.b32.xlu1 %v2998_v2, %s2915_s14  ;;  %946 = vrot.lane.b32.xlu0 %v3021_v16, %s2919_s18 }
 0x100   : > { %2476 = vrot.lane.b32.xlu1 %v2998_v2, %s2916_s15  ;;  %1021 = vrot.lane.b32.xlu0 %v3021_v16, %s2920_s19 }
 0x104   : > { %1094 = vrot.lane.b32.xlu1 %v3015_v13, %s2921_s20  ;;  %1096 = vrot.lane.b32.xlu0 %v3021_v16, %s2921_s20 }
 0x108   : > { %1169 = vrot.lane.b32.xlu1 %v3015_v13, %s2922_s21  ;;  %1171 = vrot.lane.b32.xlu0 %v3021_v16, %s2922_s21 }
 0x10c   : > { %1244 = vrot.lane.b32.xlu1 %v3015_v13, %s2923_s22  ;;  %1246 = vrot.lane.b32.xlu0 %v3021_v16, %s2923_s22  ;;  %s2936_s22 = smov 94  }
 0x110   : > { %1319 = vrot.lane.b32.xlu1 %v3015_v13, %s2924_s23  ;;  %1321 = vrot.lane.b32.xlu0 %v3021_v16, %s2924_s23 }
 0x114   : > { %1394 = vrot.lane.b32.xlu1 %v3015_v13, %s2915_s14 }
 0x118   : > { %1535 = vrot.lane.b32.xlu1 %v3015_v13, %s2916_s15 }
 0x11c   : > { %1610 = vrot.lane.b32.xlu1 %v3015_v13, %s2925_s26 }
 0x120   : > { %1685 = vrot.lane.b32.xlu1 %v3015_v13, %s2926_s27 }
 0x124   : > { %1760 = vrot.lane.b32.xlu1 %v3015_v13, %s2927_s28 }
 0x128   : > { %1835 = vrot.lane.b32.xlu1 %v3015_v13, %s2928_s29 }
 0x12c   : > { %1910 = vrot.lane.b32.xlu1 %v3015_v13, %s2929_s30 }
 0x130   : > { %1985 = vrot.lane.b32.xlu1 %v3015_v13, %s2930_s8 }
 0x134   : > { %2060 = vrot.lane.b32.xlu1 %v3015_v13, %s2931_s9 }
 0x138   : > { %2135 = vrot.lane.b32.xlu1 %v3015_v13, %s2932_s10 }
 0x13c   : > { %2210 = vrot.lane.b32.xlu1 %v3015_v13, %s2933_s11 }
 0x140   : > { %2285 = vrot.lane.b32.xlu1 %v3015_v13, %s2934_s12 }
 0x152   : > { %v577_v24 = vpop.permute.xlu1 %576  ;;  %v590_v25 = vpop.permute.xlu0 %589 }
 0x156   : > { %v720_v28 = vpop.permute.xlu1 %719  ;;  %v3104_v29 = vpop.permute.xlu0 %2461 }
 0x15a   : > { %v592_v33 = vpop.permute.xlu1 %591  ;;  %v3119_v34 = vpop.permute.xlu0 %2478 }
 0x15b   : > { %v594_v35 = vsel %vm593_vm14, %v590_v25, %v592_v33  ;;  %v595_v36 = vsel %vm593_vm14, %v592_v33, %v590_v25  ;;  %vm3955_vm14 = vcmask 64512  }
 0x15c   : > { %v596_v37 = vmul.f32 %v2662_v31, %v595_v36  ;;  %v597_v38 = vmul.f32 %v2663_v32, %v594_v35 }
 0x15e   : > { %v795_v41 = vpop.permute.xlu1 %794  ;;  %v579_v42 = vpop.permute.xlu0 %578  ;;  %v602_v43 = vpack.c.bf16 %v597_v38, %v597_v38  ;;  %v601_v44 = vpack.c.bf16 %v596_v37, %v596_v37 }
 0x15f   : > { %v581_v45 = vsel %vm580_vm3, %v577_v24, %v579_v42  ;;  %v582_v46 = vsel %vm580_vm3, %v579_v42, %v577_v24  ;;  %vm3956_vm3 = vcmp.lt.s32.totalorder %v3082_v22, 14 }
 0x160   : > { %v583_v48 = vmul.f32 %v2660_v39, %v582_v46  ;;  %v584_v49 = vmul.f32 %v2661_v40, %v581_v45  ;;  %2714 = vmatprep.subr.msk.bf16.mxu1 %vm612_vm4, %v602_v43  ;;  %v614_v50 = vsel %vm612_vm4, %v601_v44, 0  ;;  %vm3175_vm10 = vmand %vm3090_vm6, %vm3956_vm3  ;;  %v2881_v43 = vld [vmem:[%s3939_s2 + $0x18] sm:$0xff]  }
 0x161   : > { %634 = vmatpush1.bf16.msra.mxu1 %v614_v50  ;;  %vm3193_vm6 = vmand %vm3095_vm8, %vm345_vm0 }
 0x162   : > { %v587_v54 = vpack.c.bf16 %v583_v48, %v583_v48  ;;  %v588_v55 = vpack.c.bf16 %v584_v49, %v584_v49  ;;  %v870_v56 = vpop.permute.xlu1 %869  ;;  %v722_v57 = vpop.permute.xlu0 %721  ;;  %v2669_v31 = vsel %vm3193_vm6, 1.0, %v2935_v30  ;;  %vm3233_vm8 = vmand %vm3202_vm15, %vm3958_vm11  ;;  %vm3951_vm6 = vcmp.lt.s32.totalorder %v3073_v18, 127 }
 0x163   : > { %v724_v59 = vsel %vm723_vm12, %v720_v28, %v722_v57  ;;  %v725_v60 = vsel %vm723_vm12, %v722_v57, %v720_v28  ;;  %vm297_vm12 = vcmp.lt.s32.totalorder %v3079_v21, 17  ;;  %v2668_v28 = vsel %vm3175_vm10, 1.0, %v2935_v30 }
 0x164   : > { %v726_v61 = vmul.f32 %v2664_v47, %v725_v60  ;;  %v727_v62 = vmul.f32 %v2665_v52, %v724_v59  ;;  %2717 = vmatprep.subr.msk.bf16.mxu0 %vm612_vm4, %v588_v55  ;;  %2715 = vmatmul.mubr.msk.bf16.vlgmr.msra.gmra.mxu1 %vm3955_vm14, %v2878_v51  ;;  %v671_v63 = vsel %vm612_vm4, %v587_v54, 0  ;;  %vm3212_vm1 = vmand %vm295_vm9, %vm297_vm12  ;;  %vm948_vm10 = vcmp.lt.s32.totalorder %v3073_v18, 18 }
 0x165   : > { %691 = vmatpush1.bf16.msra.mxu0 %v671_v63  ;;  %779 = vmatprep.mubr.bf16.mxu1 %v2911_v0  ;;  %vm379_vm9 = vmand %vm3212_vm1, %vm3953_vm13  ;;  %v2670_v44 = vsel %vm3233_vm8, 1.0, %v2935_v30  ;;  %v2675_v6 = vsel %vm3212_vm1, 1.0, %v2935_v30  ;;  %vm303_vm13 = vcmp.lt.s32.totalorder %v3079_v21, 16 }
 0x166   : > { %v731_v7 = vpack.c.bf16 %v726_v61, %v726_v61  ;;  %v732_v10 = vpack.c.bf16 %v727_v62, %v727_v62  ;;  %v945_v11 = vpop.permute.xlu1 %944  ;;  %v797_v12 = vpop.permute.xlu0 %796  ;;  %v2671_v45 = vsel %vm379_vm9, 1.0, %v2935_v30  ;;  %vm1023_vm9 = vcmp.lt.s32.totalorder %v3073_v18, 17  ;;  %v2882_v62 = vld [vmem:[%s3939_s2 + $0x20] sm:$0xff]  }
 0x167   : > { %v799_v15 = vsel %vm798_vm2, %v795_v41, %v797_v12  ;;  %v800_v17 = vsel %vm798_vm2, %v797_v12, %v795_v41  ;;  %vm3977_vm2 = vcmp.ge.s32.totalorder %v3082_v22, 1 }
 0x168   : > { %v801_v24 = vmul.f32 %v2666_v4, %v800_v17  ;;  %v802_v25 = vmul.f32 %v2667_v5, %v799_v15  ;;  %2722 = vmatprep.subr.msk.bf16.mxu1 %vm612_vm4, %v732_v10  ;;  %v742_v26 = vsel %vm612_vm4, %v731_v7, 0  ;;  %2718 = vmatmul.mubr.msk.bf16.vlgmr.msra.gmra.mxu0 %vm3955_vm14, %v2879_v3  ;;  %vm3258_vm12 = vmand %vm3202_vm15, %vm3977_vm2  ;;  %v2674_v5 = vsel %vm3202_vm15, 1.0, %v2935_v30 }
 0x169   : > { %762 = vmatpush1.bf16.msra.mxu1 %v742_v26  ;;  %854 = vmatprep.mubr.bf16.mxu0 %v2911_v0  ;;  %v2672_v60 = vsel %vm3258_vm12, 1.0, %v2935_v30  ;;  %vm3981_vm12 = vcmp.lt.s32.totalorder %v3082_v22, 15 }
 0x16a   : > { %v806_v33 = vpack.c.bf16 %v801_v24, %v801_v24  ;;  %v807_v35 = vpack.c.bf16 %v802_v25, %v802_v25  ;;  %v1020_v36 = vpop.permute.xlu1 %1019  ;;  %v872_v37 = vpop.permute.xlu0 %871 }
 0x16b   : > { %v874_v38 = vsel %vm873_vm7, %v870_v56, %v872_v37  ;;  %v875_v39 = vsel %vm873_vm7, %v872_v37, %v870_v56  ;;  %vm3980_vm7 = vcmp.ge.s32.totalorder %v3086_v23, 1 }
 0x16c   : > { %v876_v40 = vmul.f32 %v2668_v28, %v875_v39  ;;  %v877_v41 = vmul.f32 %v2669_v31, %v874_v38  ;;  %2727 = vmatprep.subr.msk.bf16.mxu0 %vm612_vm4, %v807_v35  ;;  %2723 = vmatmul.mubr.msk.bf16.vlgmr.msra.gmra.mxu1 %vm3955_vm14, %v2880_v27  ;;  %v817_v42 = vsel %vm612_vm4, %v806_v33, 0  ;;  %vm385_vm8 = vmand %vm3212_vm1, %vm3980_vm7  ;;  %v2883_v31 = vld [vmem:[%s3939_s2 + $0x28] sm:$0xff]  }
 0x16d   : > { %837 = vmatpush1.bf16.msra.mxu0 %v817_v42  ;;  %929 = vmatprep.mubr.bf16.mxu1 %v2911_v0  ;;  %v2673_v61 = vsel %vm385_vm8, 1.0, %v2935_v30  ;;  %vm3982_vm8 = vcmp.lt.s32.totalorder %v3086_v23, 15  ;;  %v1472_v42 = vpack.c.bf16 %v3015_v13, %v3015_v13 }
 0x16e   : > { %v881_v47 = vpack.c.bf16 %v876_v40, %v876_v40  ;;  %v882_v48 = vpack.c.bf16 %v877_v41, %v877_v41  ;;  %v2460_v49 = vpop.permute.xlu1 %2459  ;;  %v947_v50 = vpop.permute.xlu0 %946 }
 0x16f   : > { %v2463_v51 = vsel %vm3952_vm5, %v2460_v49, %v3104_v29  ;;  %v2464_v52 = vsel %vm3952_vm5, %v3104_v29, %v2460_v49  ;;  %v949_v53 = vsel %vm948_vm10, %v945_v11, %v947_v50  ;;  %v950_v54 = vsel %vm948_vm10, %v947_v50, %v945_v11 }
 0x170   : > { %v2469_v55 = vsel %vm3977_vm2, %v2464_v52, -inf  ;;  %v2470_v56 = vsel %vm3980_vm7, %v2463_v51, -inf  ;;  %v951_v57 = vmul.f32 %v2670_v44, %v950_v54  ;;  %v952_v58 = vmul.f32 %v2671_v45, %v949_v53  ;;  %2732 = vmatprep.subr.msk.bf16.mxu1 %vm612_vm4, %v882_v48  ;;  %2728 = vmatmul.mubr.msk.bf16.vlgmr.msra.gmra.mxu0 %vm3955_vm14, %v2881_v43  ;;  %vm3983_vm2 = vmmov %vm3981_vm12 }
 0x171   : > { %v2473_v59 = vcombine.low %v2469_v55, %v2470_v56  ;;  %v892_v29 = vsel %vm612_vm4, %v881_v47, 0  ;;  %1004 = vmatprep.mubr.bf16.mxu0 %v2911_v0  ;;  %vm3954_vm10 = vcmp.lt.s32.totalorder %v3073_v18, 16  ;;  %vm3323_vm7 = vmand %vm3202_vm15, %vm3983_vm2  ;;  %vm300_vm2 = vcmp.ge.s32.totalorder %v3077_v20, 0  ;;  %v2884_v47 = vld [vmem:[%s3939_s2 + $0x30] sm:$0xff]  }
 0x172   : > { %v956_v63 = vpack.c.bf16 %v951_v57, %v951_v57  ;;  %v957_v1 = vpack.c.bf16 %v952_v58, %v952_v58  ;;  %912 = vmatpush1.bf16.msra.mxu1 %v892_v29  ;;  %v2477_v3 = vpop.permute.xlu1 %2476  ;;  %v1022_v4 = vpop.permute.xlu0 %1021  ;;  %vm301_vm5 = vcmp.ge.s32.totalorder %v3079_v21, 0  ;;  %v2676_v44 = vsel %vm3323_vm7, 1.0, %v2935_v30 }
 0x173   : > { %v2480_v7 = vsel %vm3951_vm6, %v2477_v3, %v3119_v34  ;;  %v2481_v10 = vsel %vm3951_vm6, %v3119_v34, %v2477_v3  ;;  %v1024_v11 = vsel %vm1023_vm9, %v1020_v36, %v1022_v4  ;;  %v1025_v17 = vsel %vm1023_vm9, %v1022_v4, %v1020_v36  ;;  %vm3986_vm9 = vmmov %vm3982_vm8  ;;  %v2885_v4 = vld [vmem:[%s3939_s2 + $0x38] sm:$0xff]  }
 0x174   : > { %v2486_v12 = vsel %vm3981_vm12, %v2480_v7, -inf  ;;  %v2487_v15 = vsel %vm3982_vm8, %v2481_v10, -inf  ;;  %v1027_v24 = vmul.f32 %v2673_v61, %v1024_v11  ;;  %2737 = vmatprep.subr.msk.bf16.mxu0 %vm612_vm4, %v957_v1  ;;  %v2475_v25 = vmax.f32 %v2998_v2, %v2473_v59  ;;  %vm3334_vm12 = vmand %vm3212_vm1, %vm3986_vm9 }
 0x175   : > { %v2490_v34 = vcombine.low %v2486_v12, %v2487_v15  ;;  %v1026_v26 = vmul.f32 %v2672_v60, %v1025_v17  ;;  %2733 = vmatmul.mubr.msk.bf16.vlgmr.msra.gmra.mxu1 %vm3955_vm14, %v2882_v62  ;;  %v967_v27 = vsel %vm612_vm4, %v956_v63, 0  ;;  %vm1173_vm8 = vcmp.lt.s32.totalorder %v3073_v18, 15  ;;  %vm3353_vm9 = vmand %vm3202_vm15, %vm3956_vm3  ;;  %v2886_v17 = vld [vmem:[%s3939_s2 + $0x40] sm:$0xff]  }
 0x176   : > { %v1032_v32 = vpack.c.bf16 %v1027_v24, %v1027_v24  ;;  %987 = vmatpush1.bf16.msra.mxu0 %v967_v27  ;;  %v1095_v2 = vpop.permute.xlu1 %1094  ;;  %v1097_v33 = vpop.permute.xlu0 %1096  ;;  %1079 = vmatprep.mubr.bf16.mxu1 %v2911_v0  ;;  %vm302_vm6 = vcmp.lt.s32.totalorder %v3077_v20, 16  ;;  %v2677_v45 = vsel %vm3334_vm12, 1.0, %v2935_v30  ;;  %vm3403_vm12 = vmand %vm301_vm5, %vm303_vm13  ;;  %v2678_v29 = vsel %vm3353_vm9, 1.0, %v2935_v30  ;;  %v499_v27 = vld [vmem:[%s3941_s4] sm:$0xff] }
 0x177   : > { %v3342_v36 = vmax.f32 %v2475_v25, %v2490_v34  ;;  %v1031_v37 = vpack.c.bf16 %v1026_v26, %v1026_v26  ;;  %v1099_v38 = vsel %vm3954_vm10, %v1095_v2, %v1097_v33  ;;  %v1100_v39 = vsel %vm3954_vm10, %v1097_v33, %v1095_v2  ;;  %vm3380_vm10 = vmand %vm3212_vm1, %vm345_vm0 }
 0x178   : > { %v1101_v40 = vmul.f32 %v2674_v5, %v1100_v39  ;;  %v1102_v41 = vmul.f32 %v2675_v6, %v1099_v38  ;;  %2742 = vmatprep.subr.msk.bf16.mxu1 %vm612_vm4, %v1032_v32  ;;  %vm3388_vm7 = vmand %vm300_vm2, %vm302_vm6  ;;  %vm1248_vm6 = vcmp.lt.s32.totalorder %v3073_v18, 14  ;;  %v2679_v60 = vsel %vm3380_vm10, 1.0, %v2935_v30  ;;  %v2888_v38 = vld [vmem:[%s3939_s2 + $0x48] sm:$0xff]  }
 0x179   : > { %2496 = vrot.lane.b32.xlu1 %v3342_v36, %s2921_s20  ;;  %v1042_v43 = vsel %vm612_vm4, %v1031_v37, 0  ;;  %v3370_v46 = vcombine.high %v3342_v36, %v3342_v36  ;;  %2738 = vmatmul.mubr.msk.bf16.vlgmr.msra.gmra.mxu0 %vm3955_vm14, %v2883_v31  ;;  %vm3423_vm13 = vmand %vm3388_vm7, %vm3958_vm11  ;;  %vm3999_vm5 = vcmp.ge.s32.totalorder %v3086_v23, 2  ;;  %vm1323_vm10 = vcmp.lt.s32.totalorder %v3073_v18, 2 }
 0x17a   : > { %v1106_v49 = vpack.c.bf16 %v1101_v40, %v1101_v40  ;;  %v1107_v50 = vpack.c.bf16 %v1102_v41, %v1102_v41  ;;  %1062 = vmatpush1.bf16.msra.mxu1 %v1042_v43  ;;  %v1170_v51 = vpop.permute.xlu1 %1169  ;;  %v1172_v52 = vpop.permute.xlu0 %1171  ;;  %1154 = vmatprep.mubr.bf16.mxu0 %v2911_v0  ;;  %v2680_v12 = vsel %vm3423_vm13, 1.0, %v2935_v30  ;;  %v1473_v40 = vpack.c.bf16 %v3021_v16, %v3021_v16  ;;  %v2887_v41 = vld [vmem:[%s3939_s2 + $0x50] sm:$0xff]  }
 0x17b   : > { %v1174_v54 = vsel %vm1173_vm8, %v1170_v51, %v1172_v52  ;;  %v1175_v55 = vsel %vm1173_vm8, %v1172_v52, %v1170_v51  ;;  %2498 = vrot.lane.b32.xlu0 %v3370_v46, %s2921_s20  ;;  %vm409_vm8 = vmand %vm3403_vm12, %vm3999_vm5  ;;  %v1483_v43 = vsel %vm612_vm4, %v1472_v42, 0  ;;  %vm4000_vm2 = vcmp.ge.s32.totalorder %v3082_v22, 1 }
 0x17c   : > { %v1176_v57 = vmul.f32 %v2676_v44, %v1175_v55  ;;  %v1177_v58 = vmul.f32 %v2677_v45, %v1174_v54  ;;  %2747 = vmatprep.subr.msk.bf16.mxu0 %vm612_vm4, %v1107_v50  ;;  %v1117_v59 = vsel %vm612_vm4, %v1106_v49, 0  ;;  %v2681_v15 = vsel %vm409_vm8, 1.0, %v2935_v30  ;;  %v2436_v49 = vld [vmem:[%s3942_s5 + $0x8] sm:$0xff]  ;;  %v2536_v50 = vld [vmem:[%s3943_s6] sm:$0xff]  ;;  %vm414_vm9 = vmand %vm3388_vm7, %vm4000_vm2 }
 0x17d   : > { %2360 = vrot.lane.b32.xlu1 %v3015_v13, %s2936_s22  ;;  %2743 = vmatmul.mubr.msk.bf16.vlgmr.msra.gmra.mxu1 %vm3955_vm14, %v2884_v47  ;;  %v2890_v13 = vld [vmem:[%s3939_s2 + $0x60] sm:$0xff]   ;;  %v2682_v61 = vsel %vm414_vm9, 1.0, %v2935_v30  ;;  %vm4002_vm5 = vcmp.lt.s32.totalorder %v3082_v22, 15  ;;  %vm306_vm9 = vcmp.ge.s32.totalorder %v3077_v20, 4294967295 }
 0x17e   : > { %v1181_v62 = vpack.c.bf16 %v1176_v57, %v1176_v57  ;;  %v1182_v63 = vpack.c.bf16 %v1177_v58, %v1177_v58  ;;  %1137 = vmatpush1.bf16.msra.mxu0 %v1117_v59  ;;  %v1245_v1 = vpop.permute.xlu1 %1244  ;;  %v1247_v3 = vpop.permute.xlu0 %1246  ;;  %1229 = vmatprep.mubr.bf16.mxu1 %v2911_v0  ;;  %v2435_v47 = vld [vmem:[%s3942_s5] sm:$0xff]  ;;  %vm420_vm8 = vmand %vm3388_vm7, %vm4002_vm5 }
 0x17f   : > { %v1249_v5 = vsel %vm1248_vm6, %v1245_v1, %v1247_v3  ;;  %v1250_v6 = vsel %vm1248_vm6, %v1247_v3, %v1245_v1  ;;  %1396 = vrot.lane.b32.xlu0 %v3021_v16, %s2915_s14  ;;  %vm4001_vm6 = vcmp.ge.s32.totalorder %v3086_v23, 1  ;;  %vm3570_vm5 = vmand %vm3388_vm7, %vm3956_vm3 }
 0x180   : > { %v1251_v7 = vmul.f32 %v2678_v29, %v1250_v6  ;;  %v1252_v10 = vmul.f32 %v2679_v60, %v1249_v5  ;;  %2752 = vmatprep.subr.msk.bf16.mxu1 %vm612_vm4, %v1182_v63  ;;  %v1192_v11 = vsel %vm612_vm4, %v1181_v62, 0  ;;  %vm415_vm13 = vmand %vm3403_vm12, %vm4001_vm6  ;;  %v2892_v6 = vld [vmem:[%s3939_s2 + $0x70] sm:$0xff]  }
 0x181   : > { %2513 = vrot.lane.b32.xlu1 %v3342_v36, %s2928_s29  ;;  %1212 = vmatpush1.bf16.msra.mxu1 %v1192_v11  ;;  %v2683_v62 = vsel %vm415_vm13, 1.0, %v2935_v30  ;;  %vm308_vm13 = vcmp.lt.s32.totalorder %v3077_v20, 15 }
 0x182   : > { %v1256_v24 = vpack.c.bf16 %v1251_v7, %v1251_v7  ;;  %v1257_v25 = vpack.c.bf16 %v1252_v10, %v1252_v10  ;;  %v1320_v34 = vpop.permute.xlu1 %1319  ;;  %v1322_v26 = vpop.permute.xlu0 %1321  ;;  %2748 = vmatmul.mubr.msk.bf16.vlgmr.msra.gmra.mxu0 %vm3955_vm14, %v2885_v4  ;;  %v2684_v7 = vsel %vm420_vm8, 1.0, %v2935_v30  ;;  %vm3586_vm7 = vmand %vm306_vm9, %vm308_vm13  ;;  %vm4012_vm8 = vcmp.lt.s32.totalorder %v3073_v18, 127 }
 0x183   : > { %v1324_v28 = vsel %vm1323_vm10, %v1320_v34, %v1322_v26  ;;  %v1325_v31 = vsel %vm1323_vm10, %v1322_v26, %v1320_v34  ;;  %1537 = vrot.lane.b32.xlu0 %v3021_v16, %s2916_s15  ;;  %1304 = vmatprep.mubr.bf16.mxu0 %v2911_v0  ;;  %vm4003_vm10 = vcmp.lt.s32.totalorder %v3086_v23, 15  ;;  %vm432_vm9 = vmand %vm3586_vm7, %vm3958_vm11  ;;  %vm4016_vm13 = vcmp.ge.s32.totalorder %v3086_v23, 2 }
 0x184   : > { %v1326_v32 = vmul.f32 %v2680_v12, %v1325_v31  ;;  %v1327_v2 = vmul.f32 %v2681_v15, %v1324_v28  ;;  %2757 = vmatprep.subr.msk.bf16.mxu0 %vm612_vm4, %v1257_v25  ;;  %v1267_v33 = vsel %vm612_vm4, %v1256_v24, 0  ;;  %vm421_vm2 = vmand %vm3403_vm12, %vm4003_vm10  ;;  %vm307_vm10 = vcmp.ge.s32.totalorder %v3079_v21, 4294967295  ;;  %v2889_v31 = vld [vmem:[%s3939_s2 + $0x58] sm:$0xff]  }
 0x185   : > { %503 = vperm.xlu1 %2875, %v499_v27   ;;  %2753 = vmatmul.mubr.msk.bf16.vlgmr.msra.gmra.mxu1 %vm3955_vm14, %v2886_v17  ;;  %v2685_v10 = vsel %vm421_vm2, 1.0, %v2935_v30  ;;  %vm4013_vm2 = vmmov %vm4012_vm8 }
 0x186   : > { %v1331_v35 = vpack.c.bf16 %v1326_v32, %v1326_v32  ;;  %v1332_v37 = vpack.c.bf16 %v1327_v2, %v1327_v2  ;;  %1287 = vmatpush1.bf16.msra.mxu0 %v1267_v33  ;;  %1379 = vmatprep.mubr.bf16.mxu1 %v2911_v0  ;;  %v1395_v44 = vpop.permute.xlu1 %1394  ;;  %v2686_v32 = vsel %vm3570_vm5, 1.0, %v2935_v30  ;;  %vm4017_vm5 = vcmask 64512  }
 0x187   : > { %1612 = vrot.lane.b32.xlu0 %v3021_v16, %s2925_s26 }
 0x188   : > { %2762 = vmatprep.subr.msk.bf16.mxu1 %vm612_vm4, %v1332_v37  ;;  %v1342_v39 = vsel %vm612_vm4, %v1331_v35, 0 }
 0x189   : > { %1362 = vmatpush1.bf16.msra.mxu1 %v1342_v39  ;;  %2444 = vperm.xlu1 %2875, %v2436_v49  }
 0x18a   : > { %2772 = vmatprep.subr.msk.bf16.mxu1 %vm612_vm4, %v1473_v40  ;;  %2758 = vmatmul.mubr.msk.bf16.vlgmr.msra.gmra.mxu0 %vm3955_vm14, %v2888_v38  ;;  %v1536_v45 = vpop.permute.xlu1 %1535 }
 0x18b   : > { %1687 = vrot.lane.b32.xlu0 %v3021_v16, %s2926_s27  ;;  %1454 = vmatprep.mubr.bf16.mxu0 %v2911_v0 }
 0x18d   : > { %2763 = vmatmul.mubr.msk.bf16.vlgmr.msra.gmra.mxu1 %vm3955_vm14, %v2887_v41 }
 0x18e   : > { %1503 = vmatpush1.bf16.msra.mxu1 %v1483_v43  ;;  %1520 = vmatprep.mubr.bf16.mxu1 %v2911_v0  ;;  %v1611_v48 = vpop.permute.xlu1 %1610 }
 0x18f   : > { %1762 = vrot.lane.b32.xlu0 %v3021_v16, %s2927_s28 }
 0x193   : > { %1837 = vrot.lane.b32.xlu0 %v3021_v16, %s2928_s29 }
 0x195   : > { %2773 = vmatmul.mubr.msk.bf16.vlgmr.msra.gmra.mxu1 %vm3955_vm14, %v2890_v13  ;;  %vm4004_vm14 = vcmp.lt.s32.totalorder %v3073_v18, 1  ;;  %v2688_v13 = vsel %vm432_vm9, 1.0, %v2935_v30  ;;  %vm1764_vm9 = vcmp.lt.s32.totalorder %v3073_v18, 113 }
 0x196   : > { %1670 = vmatprep.mubr.bf16.mxu1 %v2911_v0  ;;  %vm4005_vm6 = vmmov %vm4004_vm14 }
 0x197   : > { %1912 = vrot.lane.b32.xlu0 %v3021_v16, %s2929_s30 }
 0x19b   : > { %1987 = vrot.lane.b32.xlu0 %v3021_v16, %s2930_s8 }
 0x19f   : > { %2062 = vrot.lane.b32.xlu0 %v3021_v16, %s2931_s9 }
 0x1a3   : > { %2137 = vrot.lane.b32.xlu0 %v3021_v16, %s2932_s10 }
 0x1a7   : > { %2212 = vrot.lane.b32.xlu0 %v3021_v16, %s2933_s11 }
 0x1ab   : > { %2287 = vrot.lane.b32.xlu0 %v3021_v16, %s2934_s12  ;;  %s2839_s12 = sshll.u32 %s4066_s25, 6 }
 0x1ac   : > { %s3662_s17 = scalar_lea.vmem %s3944_s7, %s2839_s12 }
 0x1af   : > { %2362 = vrot.lane.b32.xlu0 %v3021_v16, %s2936_s22  ;;  %v3520_v16 = vpop.permute.xlu1 %1685 }
 0x1b3   : > { %2515 = vrot.lane.b32.xlu0 %v3370_v46, %s2928_s29  ;;  %v3522_v51 = vpop.permute.xlu1 %1760 }
 0x1b7   : > { %2439 = vperm.xlu0 %2874, %v2435_v47   ;;  %v3524_v46 = vpop.permute.xlu1 %1835 }
 0x1bb   : > { %2539 = vperm.xlu0 %2874, %v2536_v50   ;;  %v3526_v52 = vpop.permute.xlu1 %1910 }
 0x1bf   : > { %v3528_v54 = vpop.permute.xlu1 %1985 }
 0x1c3   : > { %v3530_v55 = vpop.permute.xlu1 %2060 }
 0x1c7   : > { %v3532_v57 = vpop.permute.xlu1 %2135 }
 0x1cb   : > { %v3534_v58 = vpop.permute.xlu1 %2210 }
 0x1cf   : > { %v3536_v59 = vpop.permute.xlu1 %2285 }
 0x1eb   : > { %v3548_v60 = vpop.permute.xlu1 %2496 }
 0x1ed   : > { %v3542_v29 = vpop.permute.xlu0 %2498 }
 0x1ef   : > { %v3590_v24 = vpop.permute.xlu1 %2360 }
 0x1f1   : > { %v1397_v63 = vpop.permute.xlu0 %1396 }
 0x1f2   : > { %v1399_v1 = vsel %vm4004_vm14, %v1395_v44, %v1397_v63  ;;  %v1400_v3 = vsel %vm4005_vm6, %v1397_v63, %v1395_v44  ;;  %vm309_vm14 = vcmp.lt.s32.totalorder %v3079_v21, 15  ;;  %vm3582_vm6 = vmand %vm3403_vm12, %vm345_vm0  ;;  %vm1614_vm12 = vcmp.lt.s32.totalorder %v3073_v18, 126 }
 0x1f3   : > { %v1401_v4 = vmul.f32 %v2682_v61, %v1400_v3  ;;  %v1402_v5 = vmul.f32 %v2683_v62, %v1399_v1  ;;  %vm3596_vm3 = vmand %vm307_vm10, %vm309_vm14  ;;  %v2687_v2 = vsel %vm3582_vm6, 1.0, %v2935_v30  ;;  %vm1689_vm14 = vcmp.lt.s32.totalorder %v3073_v18, 114  ;;  %v3624_v43 = vpop.permute.xlu1 %2513  ;;  %v2891_v3 = vld [vmem:[%s3939_s2 + $0x68] sm:$0xff]  }
 0x1f4   : > { %vm433_vm10 = vmand %vm3596_vm3, %vm4016_vm13  ;;  %vm4018_vm6 = vcmp.ge.s32.totalorder %v3082_v22, 1  ;;  %vm3957_vm13 = vcmp.lt.s32.totalorder %v3073_v18, 112 }
 0x1f5   : > { %v1406_v53 = vpack.c.bf16 %v1401_v4, %v1401_v4  ;;  %v1407_v12 = vpack.c.bf16 %v1402_v5, %v1402_v5  ;;  %v1538_v15 = vpop.permute.xlu0 %1537  ;;  %v2689_v44 = vsel %vm433_vm10, 1.0, %v2935_v30  ;;  %vm4022_vm10 = vmmov %vm4017_vm5 }
 0x1f6   : > { %v1540_v25 = vsel %vm4012_vm8, %v1536_v45, %v1538_v15  ;;  %v1541_v34 = vsel %vm4013_vm2, %v1538_v15, %v1536_v45  ;;  %vm3632_vm8 = vmand %vm3586_vm7, %vm4018_vm6  ;;  %vm4021_vm2 = vcmp.ge.s32.totalorder %v3086_v23, 1  ;;  %v2898_v45 = vld [vmem:[%s3939_s2 + $0xa0] sm:$0xff]  }
 0x1f7   : > { %v1542_v26 = vmul.f32 %v2684_v7, %v1540_v25  ;;  %v1543_v27 = vmul.f32 %v2685_v10, %v1541_v34  ;;  %2767 = vmatprep.subr.msk.bf16.mxu0 %vm612_vm4, %v1407_v12  ;;  %v1417_v28 = vsel %vm612_vm4, %v1406_v53, 0  ;;  %v2690_v5 = vsel %vm3632_vm8, 1.0, %v2935_v30  ;;  %vm3731_vm11 = vmand %vm3596_vm3, %vm345_vm0 }
 0x1f8   : > { %1437 = vmatpush1.bf16.msra.mxu0 %v1417_v28  ;;  %v2692_v28 = vsel %vm3586_vm7, 1.0, %v2935_v30  ;;  %vm4026_vm8 = vcmp.lt.s32.totalorder %v3086_v23, 15 }
 0x1f9   : > { %v1547_v33 = vpack.c.bf16 %v1542_v26, %v1542_v26  ;;  %v1548_v35 = vpack.c.bf16 %v1543_v27, %v1543_v27  ;;  %v1613_v37 = vpop.permute.xlu0 %1612 }
 0x1fa   : > { %v1615_v38 = vsel %vm1614_vm12, %v1611_v48, %v1613_v37  ;;  %v1616_v39 = vsel %vm1614_vm12, %v1613_v37, %v1611_v48  ;;  %vm439_vm12 = vmand %vm3596_vm3, %vm4021_vm2 }
 0x1fb   : > { %v1617_v40 = vmul.f32 %v2686_v32, %v1615_v38  ;;  %v1618_v41 = vmul.f32 %v2687_v2, %v1616_v39  ;;  %2768 = vmatmul.mubr.msk.bf16.vlgmr.msra.gmra.mxu0 %vm4017_vm5, %v2889_v31  ;;  %2777 = vmatprep.subr.msk.bf16.mxu0 %vm612_vm4, %v1548_v35  ;;  %v1558_v42 = vsel %vm612_vm4, %v1547_v33, 0  ;;  %vm3692_vm2 = vmand %vm3596_vm3, %vm4026_vm8 }
 0x1fc   : > { %1578 = vmatpush1.bf16.msra.mxu0 %v1558_v42  ;;  %1595 = vmatprep.mubr.bf16.mxu0 %v2911_v0  ;;  %v2893_v42 = vld [vmem:[%s3939_s2 + $0x78] sm:$0xff]  }
 0x1fd   : > { %v1622_v47 = vpack.c.bf16 %v1617_v40, %v1617_v40  ;;  %v1623_v48 = vpack.c.bf16 %v1618_v41, %v1618_v41  ;;  %v1688_v49 = vpop.permute.xlu0 %1687 }
 0x1fe   : > { %v1690_v50 = vsel %vm1689_vm14, %v3520_v16, %v1688_v49  ;;  %v1691_v61 = vsel %vm1689_vm14, %v1688_v49, %v3520_v16  ;;  %v2691_v16 = vsel %vm439_vm12, 1.0, %v2935_v30  ;;  %vm4023_vm14 = vcmp.lt.s32.totalorder %v3082_v22, 15 }
 0x1ff   : > { %v1692_v62 = vmul.f32 %v2688_v13, %v1690_v50  ;;  %v1693_v63 = vmul.f32 %v2689_v44, %v1691_v61  ;;  %2782 = vmatprep.subr.msk.bf16.mxu1 %vm612_vm4, %v1623_v48  ;;  %v1633_v1 = vsel %vm612_vm4, %v1622_v47, 0  ;;  %vm3681_vm6 = vmand %vm3586_vm7, %vm4023_vm14  ;;  %vm1914_vm12 = vcmp.lt.s32.totalorder %v3073_v18, 111  ;;  %v2894_v47 = vld [vmem:[%s3939_s2 + $0x80] sm:$0xff]  }
 0x200   : > { %v504_v4 = vpop.permute.xlu1 %503  ;;  %1653 = vmatpush1.bf16.msra.mxu1 %v1633_v1  ;;  %vm4029_vm14 = vcmp.lt.s32.totalorder %v3082_v22, 14  ;;  %v2694_v13 = vsel %vm3681_vm6, 1.0, %v2935_v30  ;;  %v2695_v44 = vsel %vm3692_vm2, 1.0, %v2935_v30 }
 0x201   : > { %v1697_v7 = vpack.c.bf16 %v1692_v62, %v1692_v62  ;;  %v1698_v10 = vpack.c.bf16 %v1693_v63, %v1693_v63  ;;  %v562_v11 = vadd.f32 %v3011_v8, %v504_v4  ;;  %v564_v53 = vadd.f32 %v3013_v9, %v504_v4  ;;  %v1763_v12 = vpop.permute.xlu0 %1762  ;;  %vm3716_vm8 = vmand %vm3586_vm7, %vm4029_vm14 }
 0x202   : > { %v1765_v15 = vsel %vm1764_vm9, %v3522_v51, %v1763_v12  ;;  %v1766_v25 = vsel %vm1764_vm9, %v1763_v12, %v3522_v51  ;;  %v2693_v51 = vsel %vm3596_vm3, 1.0, %v2935_v30  ;;  %vm312_vm9 = vcmp.ge.s32.totalorder %v3077_v20, 4294967294 }
 0x203   : > { %v570_v34 = vmax.f32 %v562_v11, 0.0  ;;  %v571_v26 = vmax.f32 %v564_v53, 0.0  ;;  %v1767_v27 = vmul.f32 %v2690_v5, %v1765_v15  ;;  %v1768_v8 = vmul.f32 %v2691_v16, %v1766_v25  ;;  %2778 = vmatmul.mubr.msk.bf16.vlgmr.msra.gmra.mxu0 %vm4022_vm10, %v2891_v3  ;;  %2787 = vmatprep.subr.msk.bf16.mxu0 %vm612_vm4, %v1698_v10  ;;  %v2895_v25 = vld [vmem:[%s3939_s2 + $0x88] sm:$0xff]  }
 0x204   : > { %v1708_v9 = vsel %vm612_vm4, %v1697_v7, 0  ;;  %2783 = vmatmul.mubr.msk.bf16.vlgmr.msra.gmra.mxu1 %vm4017_vm5, %v2892_v6  ;;  %1745 = vmatprep.mubr.bf16.mxu0 %v2911_v0  ;;  %vm313_vm10 = vcmp.ge.s32.totalorder %v3079_v21, 4294967294  ;;  %vm314_vm5 = vcmp.lt.s32.totalorder %v3077_v20, 14  ;;  %vm4043_vm14 = vcmp.ge.s32.totalorder %v3086_v23, 2 }
 0x205   : > { %574 = vst [vmem:[%s3662_s17] sm:$0xff] %v570_v34  ;;  %575 = vst [vmem:[%s3662_s17 + $0x8] sm:$0xff] %v571_v26  ;;  %v1772_v32 = vpack.c.bf16 %v1767_v27, %v1767_v27  ;;  %v1773_v2 = vpack.c.bf16 %v1768_v8, %v1768_v8  ;;  %1728 = vmatpush1.bf16.msra.mxu0 %v1708_v9  ;;  %v1838_v33 = vpop.permute.xlu0 %1837  ;;  %1820 = vmatprep.mubr.bf16.mxu1 %v2911_v0 }
 0x206   : > { %v1840_v37 = vsel %vm3957_vm13, %v3524_v46, %v1838_v33  ;;  %v1841_v38 = vsel %vm3957_vm13, %v1838_v33, %v3524_v46  ;;  %vm315_vm13 = vcmp.lt.s32.totalorder %v3079_v21, 14  ;;  %vm3742_vm6 = vmand %vm312_vm9, %vm314_vm5  ;;  %vm4038_vm9 = vcmask 64512  }
 0x207   : > { %v1842_v39 = vmul.f32 %v2692_v28, %v1840_v37  ;;  %v1843_v40 = vmul.f32 %v2693_v51, %v1841_v38  ;;  %2792 = vmatprep.subr.msk.bf16.mxu1 %vm612_vm4, %v1773_v2  ;;  %v1783_v41 = vsel %vm612_vm4, %v1772_v32, 0  ;;  %vm3754_vm2 = vmand %vm313_vm10, %vm315_vm13  ;;  %vm1989_vm5 = vcmp.lt.s32.totalorder %v3073_v18, 110 }
 0x208   : > { %1803 = vmatpush1.bf16.msra.mxu1 %v1783_v41  ;;  %v2697_v21 = vsel %vm3731_vm11, 1.0, %v2935_v30  ;;  %vm4039_vm13 = vmmov %vm4038_vm9  ;;  %vm2064_vm11 = vcmp.lt.s32.totalorder %v3073_v18, 98 }
 0x209   : > { %v1847_v48 = vpack.c.bf16 %v1842_v39, %v1842_v39  ;;  %v1848_v49 = vpack.c.bf16 %v1843_v40, %v1843_v40  ;;  %v1913_v50 = vpop.permute.xlu0 %1912 }
 0x20a   : > { %v1915_v62 = vsel %vm1914_vm12, %v3526_v52, %v1913_v50  ;;  %v1916_v63 = vsel %vm1914_vm12, %v1913_v50, %v3526_v52  ;;  %v2696_v52 = vsel %vm3716_vm8, 1.0, %v2935_v30  ;;  %vm4040_vm12 = vcmp.ge.s32.totalorder %v3082_v22, 2  ;;  %vm463_vm8 = vmand %vm3754_vm2, %vm4043_vm14 }
 0x20b   : > { %v1917_v3 = vmul.f32 %v2694_v13, %v1915_v62  ;;  %v1918_v20 = vmul.f32 %v2695_v44, %v1916_v63  ;;  %2788 = vmatmul.mubr.msk.bf16.vlgmr.msra.gmra.mxu0 %vm4038_vm9, %v2893_v42  ;;  %2797 = vmatprep.subr.msk.bf16.mxu0 %vm612_vm4, %v1848_v49  ;;  %v1858_v4 = vsel %vm612_vm4, %v1847_v48, 0  ;;  %vm3773_vm10 = vmand %vm3742_vm6, %vm4040_vm12  ;;  %v2699_v26 = vsel %vm463_vm8, 1.0, %v2935_v30  ;;  %v2897_v13 = vld [vmem:[%s3939_s2 + $0x98] sm:$0xff]  }
 0x20c   : > { %1878 = vmatpush1.bf16.msra.mxu0 %v1858_v4  ;;  %2793 = vmatmul.mubr.msk.bf16.vlgmr.msra.gmra.mxu1 %vm4039_vm13, %v2894_v47  ;;  %v2698_v34 = vsel %vm3773_vm10, 1.0, %v2935_v30  ;;  %vm4044_vm9 = vcmp.ge.s32.totalorder %v3082_v22, 1  ;;  %vm4045_vm13 = vcmp.ge.s32.totalorder %v3086_v23, 1  ;;  %vm4046_vm10 = vcmask 64512  }
 0x20d   : > { %v1922_v16 = vpack.c.bf16 %v1917_v3, %v1917_v3  ;;  %v1923_v6 = vpack.c.bf16 %v1918_v20, %v1918_v20  ;;  %v1988_v7 = vpop.permute.xlu0 %1987  ;;  %1895 = vmatprep.mubr.bf16.mxu0 %v2911_v0  ;;  %1970 = vmatprep.mubr.bf16.mxu1 %v2911_v0  ;;  %vm469_vm12 = vmand %vm3754_vm2, %vm4045_vm13  ;;  %vm2139_vm14 = vcmp.lt.s32.totalorder %v3073_v18, 97  ;;  %v2702_v44 = vsel %vm3742_vm6, 1.0, %v2935_v30 }
 0x20e   : > { %v1990_v10 = vsel %vm1989_vm5, %v3528_v54, %v1988_v7  ;;  %v1991_v11 = vsel %vm1989_vm5, %v1988_v7, %v3528_v54  ;;  %vm468_vm5 = vmand %vm3742_vm6, %vm4044_vm9  ;;  %v2896_v54 = vld [vmem:[%s3939_s2 + $0x90] sm:$0xff]   ;;  %v2701_v35 = vsel %vm469_vm12, 1.0, %v2935_v30  ;;  %vm4048_vm9 = vcmp.lt.s32.totalorder %v3082_v22, 15 }
 0x20f   : > { %v1992_v53 = vmul.f32 %v2696_v52, %v1990_v10  ;;  %v1993_v12 = vmul.f32 %v2697_v21, %v1991_v11  ;;  %2802 = vmatprep.subr.msk.bf16.mxu1 %vm612_vm4, %v1923_v6  ;;  %v1933_v15 = vsel %vm612_vm4, %v1922_v16, 0  ;;  %v2700_v33 = vsel %vm468_vm5, 1.0, %v2935_v30  ;;  %vm4047_vm8 = vmmov %vm4046_vm10  ;;  %v2899_v11 = vld [vmem:[%s3939_s2 + $0xa8] sm:$0xff]  }
 0x210   : > { %1953 = vmatpush1.bf16.msra.mxu1 %v1933_v15  ;;  %vm480_vm5 = vmand %vm3742_vm6, %vm4048_vm9  ;;  %vm4049_vm13 = vcmp.lt.s32.totalorder %v3086_v23, 15  ;;  %vm4051_vm9 = vcmp.lt.s32.totalorder %v3082_v22, 14 }
 0x211   : > { %v1997_v27 = vpack.c.bf16 %v1992_v53, %v1992_v53  ;;  %v1998_v8 = vpack.c.bf16 %v1993_v12, %v1993_v12  ;;  %v2063_v9 = vpop.permute.xlu0 %2062  ;;  %vm481_vm12 = vmand %vm3754_vm2, %vm4049_vm13  ;;  %v2704_v4 = vsel %vm480_vm5, 1.0, %v2935_v30  ;;  %vm4054_vm13 = vcmp.lt.s32.totalorder %v3073_v18, 16 }
 0x212   : > { %v2065_v28 = vsel %vm2064_vm11, %v3530_v55, %v2063_v9  ;;  %v2066_v51 = vsel %vm2064_vm11, %v2063_v9, %v3530_v55  ;;  %vm2214_vm11 = vcmp.lt.s32.totalorder %v3073_v18, 96  ;;  %v2705_v52 = vsel %vm481_vm12, 1.0, %v2935_v30  ;;  %vm487_vm5 = vmand %vm3754_vm2, %vm345_vm0 }
 0x213   : > { %v2067_v31 = vmul.f32 %v2698_v34, %v2065_v28  ;;  %v2068_v32 = vmul.f32 %v2699_v26, %v2066_v51  ;;  %2798 = vmatmul.mubr.msk.bf16.vlgmr.msra.gmra.mxu0 %vm4046_vm10, %v2895_v25  ;;  %2807 = vmatprep.subr.msk.bf16.mxu0 %vm612_vm4, %v1998_v8  ;;  %v2008_v2 = vsel %vm612_vm4, %v1997_v27, 0  ;;  %vm4050_vm10 = vmmov %vm4047_vm8  ;;  %v2500_v22 = vsel %vm4054_vm13, %v3548_v60, %v3542_v29 }
 0x214   : > { %2028 = vmatpush1.bf16.msra.mxu0 %v2008_v2  ;;  %2803 = vmatmul.mubr.msk.bf16.vlgmr.msra.gmra.mxu1 %vm4047_vm8, %v2896_v54  ;;  %vm2364_vm0 = vcmp.lt.s32.totalorder %v3073_v18, 94  ;;  %v2507_v12 = vsel %vm3212_vm1, %v2500_v22, -inf  ;;  %vm4058_vm1 = vcmp.lt.s32.totalorder %v3073_v18, 112 }
 0x215   : > { %v2072_v37 = vpack.c.bf16 %v2067_v31, %v2067_v31  ;;  %v2073_v38 = vpack.c.bf16 %v2068_v32, %v2068_v32  ;;  %v2138_v55 = vpop.permute.xlu0 %2137  ;;  %2045 = vmatprep.mubr.bf16.mxu0 %v2911_v0  ;;  %2120 = vmatprep.mubr.bf16.mxu1 %v2911_v0  ;;  %vm4059_vm12 = vmmov %vm4058_vm1 }
 0x216   : > { %v2140_v39 = vsel %vm2139_vm14, %v3532_v57, %v2138_v55  ;;  %v2141_v40 = vsel %vm2139_vm14, %v2138_v55, %v3532_v57  ;;  %v2703_v57 = vsel %vm3754_vm2, 1.0, %v2935_v30  ;;  %vm2289_vm14 = vcmp.lt.s32.totalorder %v3073_v18, 95  ;;  %vm4056_vm2 = vmmov %vm4047_vm8  ;;  %v2902_v18 = vld [vmem:[%s3939_s2 + $0xc0] sm:$0xff]  }
 0x217   : > { %v2142_v41 = vmul.f32 %v2700_v33, %v2140_v39  ;;  %v2143_v42 = vmul.f32 %v2701_v35, %v2141_v40  ;;  %2812 = vmatprep.subr.msk.bf16.mxu1 %vm612_vm4, %v2073_v38  ;;  %v2083_v46 = vsel %vm612_vm4, %v2072_v37, 0  ;;  %v2901_v33 = vld [vmem:[%s3939_s2 + $0xb8] sm:$0xff]   ;;  %v2530_v55 = vld [vmem:[%s3940_s3] sm:$0xf] }
 0x218   : > { %2103 = vmatpush1.bf16.msra.mxu1 %v2083_v46 }
 0x219   : > { %v2147_v47 = vpack.c.bf16 %v2142_v41, %v2142_v41  ;;  %v2148_v48 = vpack.c.bf16 %v2143_v42, %v2143_v42  ;;  %v2213_v49 = vpop.permute.xlu0 %2212 }
 0x21a   : > { %v2215_v50 = vsel %vm2214_vm11, %v3534_v58, %v2213_v49  ;;  %v2216_v62 = vsel %vm2214_vm11, %v2213_v49, %v3534_v58  ;;  %vm3855_vm11 = vmand %vm3742_vm6, %vm4051_vm9 }
 0x21b   : > { %v2217_v63 = vmul.f32 %v2702_v44, %v2215_v50  ;;  %v2218_v3 = vmul.f32 %v2703_v57, %v2216_v62  ;;  %2808 = vmatmul.mubr.msk.bf16.vlgmr.msra.gmra.mxu0 %vm4050_vm10, %v2897_v13  ;;  %2817 = vmatprep.subr.msk.bf16.mxu0 %vm612_vm4, %v2148_v48  ;;  %v2158_v20 = vsel %vm612_vm4, %v2147_v47, 0  ;;  %vm4055_vm6 = vmmov %vm4054_vm13 }
 0x21c   : > { %2178 = vmatpush1.bf16.msra.mxu0 %v2158_v20  ;;  %2813 = vmatmul.mubr.msk.bf16.vlgmr.msra.gmra.mxu1 %vm4047_vm8, %v2898_v45  ;;  %v2501_v61 = vsel %vm4055_vm6, %v3542_v29, %v3548_v60  ;;  %v2706_v29 = vsel %vm3855_vm11, 1.0, %v2935_v30  ;;  %v2707_v60 = vsel %vm487_vm5, 1.0, %v2935_v30 }
 0x21d   : > { %v2222_v21 = vpack.c.bf16 %v2217_v63, %v2217_v63  ;;  %v2223_v5 = vpack.c.bf16 %v2218_v3, %v2218_v3  ;;  %v2288_v16 = vpop.permute.xlu0 %2287  ;;  %2195 = vmatprep.mubr.bf16.mxu0 %v2911_v0  ;;  %2270 = vmatprep.mubr.bf16.mxu1 %v2911_v0  ;;  %v2506_v53 = vsel %vm3202_vm15, %v2501_v61, -inf  ;;  %vm4057_vm15 = vmmov %vm4056_vm2 }
 0x21e   : > { %v2290_v6 = vsel %vm2289_vm14, %v3536_v59, %v2288_v16  ;;  %v2291_v23 = vsel %vm2289_vm14, %v2288_v16, %v3536_v59  ;;  %v2900_v59 = vld [vmem:[%s3939_s2 + $0xb0] sm:$0xff]   ;;  %v2510_v14 = vcombine.low %v2506_v53, %v2507_v12  ;;  %vm4064_vm14 = vcmask 31744  }
 0x21f   : > { %v2292_v1 = vmul.f32 %v2704_v4, %v2290_v6  ;;  %v2293_v7 = vmul.f32 %v2705_v52, %v2291_v23  ;;  %2822 = vmatprep.subr.msk.bf16.mxu1 %vm612_vm4, %v2223_v5  ;;  %v2233_v10 = vsel %vm612_vm4, %v2222_v21, 0 }
 0x220   : > { %2253 = vmatpush1.bf16.msra.mxu1 %v2233_v10  ;;  %v2512_v35 = vmax.f32 %v3342_v36, %v2510_v14 }
 0x221   : > { %v2297_v15 = vpack.c.bf16 %v2292_v1, %v2292_v1  ;;  %v2298_v25 = vpack.c.bf16 %v2293_v7, %v2293_v7  ;;  %v2363_v34 = vpop.permute.xlu0 %2362 }
 0x222   : > { %v2365_v26 = vsel %vm2364_vm0, %v3590_v24, %v2363_v34  ;;  %v2366_v54 = vsel %vm2364_vm0, %v2363_v34, %v3590_v24 }
 0x223   : > { %v2367_v27 = vmul.f32 %v2706_v29, %v2365_v26  ;;  %v2368_v8 = vmul.f32 %v2707_v60, %v2366_v54  ;;  %2818 = vmatmul.mubr.msk.bf16.vlgmr.msra.gmra.mxu0 %vm4056_vm2, %v2899_v11  ;;  %2827 = vmatprep.subr.msk.bf16.mxu0 %vm612_vm4, %v2298_v25  ;;  %v2308_v30 = vsel %vm612_vm4, %v2297_v15, 0 }
 0x224   : > { %2328 = vmatpush1.bf16.msra.mxu0 %v2308_v30  ;;  %2823 = vmatmul.mubr.msk.bf16.vlgmr.msra.gmra.mxu1 %vm4057_vm15, %v2900_v59  ;;  %v653_v39 = vpop.f32.mrf.mxu1 }
 0x225   : > { %v2372_v19 = vpack.c.bf16 %v2367_v27, %v2367_v27  ;;  %v2373_v9 = vpack.c.bf16 %v2368_v8, %v2368_v8  ;;  %v2516_v28 = vpop.permute.xlu0 %2515  ;;  %2345 = vmatprep.mubr.bf16.mxu0 %v2911_v0  ;;  %2420 = vmatprep.mubr.bf16.mxu1 %v2911_v0 }
 0x226   : > { %v2517_v24 = vsel %vm4058_vm1, %v3624_v43, %v2516_v28  ;;  %v2518_v51 = vsel %vm4059_vm12, %v2516_v28, %v3624_v43  ;;  %v655_v40 = vpop.f32.mrf.mxu1 }
 0x227   : > { %v2523_v31 = vsel %vm3586_vm7, %v2517_v24, -inf  ;;  %v2524_v32 = vsel %vm3596_vm3, %v2518_v51, -inf  ;;  %2832 = vmatprep.subr.msk.bf16.mxu1 %vm612_vm4, %v2373_v9  ;;  %v2383_v2 = vsel %vm612_vm4, %v2372_v19, 0  ;;  %vm4060_vm7 = vmmov %vm4056_vm2  ;;  %vm4062_vm4 = vcmask 1041408  }
 0x228   : > { %v2527_v37 = vcombine.low %v2523_v31, %v2524_v32  ;;  %2403 = vmatpush1.bf16.msra.mxu1 %v2383_v2  ;;  %vm4061_vm3 = vmmov %vm4056_vm2  ;;  %v657_v41 = vpop.f32.mrf.mxu1  ;;  %v710_v44 = vpop.f32.mrf.mxu0 }
 0x229   : > { %vm4063_vm10 = vmmov %vm4062_vm4  ;;  %v711_v60 = vadd.f32 %v710_v44, %v653_v39 }
 0x22a   : > { %v2529_v17 = vmax.f32 %v2512_v35, %v2527_v37  ;;  %v659_v42 = vpop.f32.mrf.mxu1  ;;  %v712_v57 = vpop.f32.mrf.mxu0 }
 0x22b   : > { %2828 = vmatmul.mubr.msk.bf16.vlgmr.msra.gmra.mxu0 %vm4060_vm7, %v2901_v33  ;;  %v713_v59 = vadd.f32 %v712_v57, %v655_v40 }
 0x22c   : > { %v2532_v56 = vcombine.high %v2529_v17, %v2529_v17  ;;  %2833 = vmatmul.mubr.msk.bf16.vlgmr.msra.gmra.mxu1 %vm4061_vm3, %v2902_v18  ;;  %v2534_v43 = vpack.c.bf16 %v2529_v17, %v2529_v17  ;;  %2583 = vmatprep.mubr.bf16.mxu0 %v2911_v0  ;;  %v781_v46 = vpop.f32.mrf.mxu1  ;;  %v714_v47 = vpop.f32.mrf.mxu0 }
 0x22d   : > { %v790_v15 = vadd.f32 %v781_v46, %v711_v60  ;;  %v715_v25 = vadd.f32 %v714_v47, %v657_v41 }
 0x22e   : > { %v2535_v38 = vpack.c.bf16 %v2532_v56, %v2532_v56  ;;  %v2546_v36 = vsel %vm4063_vm10, %v2534_v43, 0  ;;  %v783_v13 = vpop.f32.mrf.mxu1  ;;  %v716_v49 = vpop.f32.mrf.mxu0 }
 0x22f   : > { %v791_v34 = vadd.f32 %v783_v13, %v713_v59  ;;  %v717_v26 = vadd.f32 %v716_v49, %v659_v42 }
 0x230   : > { %2834 = vmatprep.subr.msk.bf16.mxu0 %vm4062_vm4, %v2535_v38  ;;  %v785_v0 = vpop.f32.mrf.mxu1  ;;  %v856_v62 = vpop.f32.mrf.mxu0 }
 0x231   : > { %2566 = vmatpush1.bf16.msra.mxu0 %v2546_v36  ;;  %v792_v8 = vadd.f32 %v785_v0, %v715_v25  ;;  %v865_v30 = vadd.f32 %v856_v62, %v790_v15 }
 0x232   : > { %v787_v45 = vpop.f32.mrf.mxu1  ;;  %v858_v3 = vpop.f32.mrf.mxu0 }
 0x233   : > { %v793_v14 = vadd.f32 %v787_v45, %v717_v26  ;;  %v866_v19 = vadd.f32 %v858_v3, %v791_v34 }
 0x234   : > { %2835 = vmatmul.mubr.msk.bf16.vlgmr.msra.gmra.mxu0 %vm4064_vm14, %v2530_v55  ;;  %v860_v4 = vpop.f32.mrf.mxu0 }
 0x235   : > { %v931_v48 = vpop.f32.mrf.mxu1  ;;  %v867_v51 = vadd.f32 %v860_v4, %v792_v8 }
 0x236   : > { %v862_v58 = vpop.f32.mrf.mxu0  ;;  %v940_v24 = vadd.f32 %v931_v48, %v865_v30 }
 0x237   : > { %v933_v50 = vpop.f32.mrf.mxu1  ;;  %v868_v32 = vadd.f32 %v862_v58, %v793_v14 }
 0x238   : > { %v941_v31 = vadd.f32 %v933_v50, %v866_v19 }
 0x239   : > { %v935_v63 = vpop.f32.mrf.mxu1  ;;  %v1006_v5 = vpop.f32.mrf.mxu0 }
 0x23a   : > { %v942_v35 = vadd.f32 %v935_v63, %v867_v51  ;;  %v1015_v37 = vadd.f32 %v1006_v5, %v940_v24 }
 0x23b   : > { %v937_v20 = vpop.f32.mrf.mxu1  ;;  %v1008_v22 = vpop.f32.mrf.mxu0 }
 0x23c   : > { %v943_v18 = vadd.f32 %v937_v20, %v868_v32  ;;  %v1016_v17 = vadd.f32 %v1008_v22, %v941_v31 }
 0x23d   : > { %v1081_v52 = vpop.f32.mrf.mxu1  ;;  %v1010_v6 = vpop.f32.mrf.mxu0 }
 0x23e   : > { %v1090_v38 = vadd.f32 %v1081_v52, %v1015_v37  ;;  %v1017_v36 = vadd.f32 %v1010_v6, %v942_v35 }
 0x23f   : > { %v1083_v21 = vpop.f32.mrf.mxu1  ;;  %v1012_v1 = vpop.f32.mrf.mxu0 }
 0x240   : > { %v1091_v39 = vadd.f32 %v1083_v21, %v1016_v17  ;;  %v1018_v40 = vadd.f32 %v1012_v1, %v943_v18 }
 0x241   : > { %v1085_v16 = vpop.f32.mrf.mxu1 }
 0x242   : > { %v1156_v10 = vpop.f32.mrf.mxu0  ;;  %v1092_v42 = vadd.f32 %v1085_v16, %v1017_v36 }
 0x243   : > { %v1087_v61 = vpop.f32.mrf.mxu1  ;;  %v1165_v46 = vadd.f32 %v1156_v10, %v1090_v38 }
 0x244   : > { %v1158_v29 = vpop.f32.mrf.mxu0  ;;  %v1093_v0 = vadd.f32 %v1087_v61, %v1018_v40 }
 0x245   : > { %v1231_v23 = vpop.f32.mrf.mxu1  ;;  %v1166_v57 = vadd.f32 %v1158_v29, %v1091_v39 }
 0x246   : > { %v1160_v12 = vpop.f32.mrf.mxu0  ;;  %v1240_v47 = vadd.f32 %v1231_v23, %v1165_v46 }
 0x247   : > { %v1233_v7 = vpop.f32.mrf.mxu1  ;;  %v1167_v48 = vadd.f32 %v1160_v12, %v1092_v42 }
 0x248   : > { %v1162_v27 = vpop.f32.mrf.mxu0  ;;  %v1241_v62 = vadd.f32 %v1233_v7, %v1166_v57 }
 0x249   : > { %v1235_v11 = vpop.f32.mrf.mxu1  ;;  %v1168_v63 = vadd.f32 %v1162_v27, %v1093_v0 }
 0x24a   : > { %v1306_v28 = vpop.f32.mrf.mxu0  ;;  %v1242_v20 = vadd.f32 %v1235_v11, %v1167_v48 }
 0x24b   : > { %v1237_v53 = vpop.f32.mrf.mxu1  ;;  %v1315_v4 = vadd.f32 %v1306_v28, %v1240_v47 }
 0x24c   : > { %v1308_v33 = vpop.f32.mrf.mxu0  ;;  %v1243_v21 = vadd.f32 %v1237_v53, %v1168_v63 }
 0x24d   : > { %v1381_v54 = vpop.f32.mrf.mxu1  ;;  %v1316_v5 = vadd.f32 %v1308_v33, %v1241_v62 }
 0x24e   : > { %v1310_v43 = vpop.f32.mrf.mxu0  ;;  %v1390_v6 = vadd.f32 %v1381_v54, %v1315_v4 }
 0x24f   : > { %v1383_v9 = vpop.f32.mrf.mxu1  ;;  %v1317_v1 = vadd.f32 %v1310_v43, %v1242_v20 }
 0x250   : > { %v1312_v41 = vpop.f32.mrf.mxu0  ;;  %v1391_v29 = vadd.f32 %v1383_v9, %v1316_v5 }
 0x251   : > { %v1385_v2 = vpop.f32.mrf.mxu1  ;;  %v1318_v23 = vadd.f32 %v1312_v41, %v1243_v21 }
 0x252   : > { %v1392_v7 = vadd.f32 %v1385_v2, %v1317_v1 }
 0x253   : > { %v1387_v56 = vpop.f32.mrf.mxu1 }
 0x254   : > { %v1393_v34 = vadd.f32 %v1387_v56, %v1318_v23 }
 0x255   : > { %v1522_v55 = vpop.f32.mrf.mxu1 }
 0x257   : > { %v1524_v13 = vpop.f32.mrf.mxu1 }
 0x259   : > { %v1526_v49 = vpop.f32.mrf.mxu1 }
 0x25b   : > { %v1528_v52 = vpop.f32.mrf.mxu1 }
 0x2bb   : > { %v1456_v44 = vpop.f32.mrf.mxu0 }
 0x2bc   : > { %v1465_v60 = vadd.f32 %v1456_v44, %v1390_v6 }
 0x2bd   : > { %v1458_v45 = vpop.f32.mrf.mxu0 }
 0x2be   : > { %v1466_v15 = vadd.f32 %v1458_v45, %v1391_v29  ;;  %v1531_v26 = vadd.f32 %v1522_v55, %v1465_v60 }
 0x2bf   : > { %v1460_v50 = vpop.f32.mrf.mxu0 }
 0x2c0   : > { %v1467_v27 = vadd.f32 %v1460_v50, %v1392_v7  ;;  %v1532_v30 = vadd.f32 %v1524_v13, %v1466_v15 }
 0x2c1   : > { %v1462_v3 = vpop.f32.mrf.mxu0 }
 0x2c2   : > { %v1468_v14 = vadd.f32 %v1462_v3, %v1393_v34  ;;  %v1533_v24 = vadd.f32 %v1526_v49, %v1467_v27 }
 0x2c3   : > { %v1597_v58 = vpop.f32.mrf.mxu0 }
 0x2c4   : > { %v1672_v16 = vpop.f32.mrf.mxu1  ;;  %v1606_v54 = vadd.f32 %v1597_v58, %v1531_v26  ;;  %v1534_v32 = vadd.f32 %v1528_v52, %v1468_v14 }
 0x2c5   : > { %v1599_v22 = vpop.f32.mrf.mxu0 }
 0x2c6   : > { %v1674_v61 = vpop.f32.mrf.mxu1  ;;  %v1607_v9 = vadd.f32 %v1599_v22, %v1532_v30  ;;  %v1681_v33 = vadd.f32 %v1672_v16, %v1606_v54 }
 0x2c7   : > { %v1601_v10 = vpop.f32.mrf.mxu0 }
 0x2c8   : > { %v1676_v59 = vpop.f32.mrf.mxu1  ;;  %v1608_v2 = vadd.f32 %v1601_v10, %v1533_v24  ;;  %v1682_v18 = vadd.f32 %v1674_v61, %v1607_v9 }
 0x2c9   : > { %v1603_v12 = vpop.f32.mrf.mxu0 }
 0x2ca   : > { %v1678_v25 = vpop.f32.mrf.mxu1  ;;  %v1609_v17 = vadd.f32 %v1603_v12, %v1534_v32  ;;  %v1683_v36 = vadd.f32 %v1676_v59, %v1608_v2  ;;  %v2440_v2 = vpop.permute.xlu0 %2439 }
 0x2cb   : > { %v1747_v11 = vpop.f32.mrf.mxu0 }
 0x2cc   : > { %v1822_v53 = vpop.f32.mrf.mxu1  ;;  %v1756_v56 = vadd.f32 %v1747_v11, %v1681_v33  ;;  %v1684_v41 = vadd.f32 %v1678_v25, %v1609_v17 }
 0x2cd   : > { %v1749_v8 = vpop.f32.mrf.mxu0 }
 0x2ce   : > { %v1824_v19 = vpop.f32.mrf.mxu1  ;;  %v1757_v55 = vadd.f32 %v1749_v8, %v1682_v18  ;;  %v1831_v42 = vadd.f32 %v1822_v53, %v1756_v56 }
 0x2cf   : > { %v1751_v28 = vpop.f32.mrf.mxu0 }
 0x2d0   : > { %v1826_v51 = vpop.f32.mrf.mxu1  ;;  %v1758_v46 = vadd.f32 %v1751_v28, %v1683_v36  ;;  %v1832_v0 = vadd.f32 %v1824_v19, %v1757_v55 }
 0x2d1   : > { %v1753_v31 = vpop.f32.mrf.mxu0 }
 0x2d2   : > { %v1828_v35 = vpop.f32.mrf.mxu1  ;;  %v1759_v57 = vadd.f32 %v1753_v31, %v1684_v41  ;;  %v1833_v49 = vadd.f32 %v1826_v51, %v1758_v46  ;;  %v2445_v41 = vpop.permute.xlu1 %2444 }
 0x2d3   : > { %v1897_v37 = vpop.f32.mrf.mxu0 }
 0x2d4   : > { %v1972_v43 = vpop.f32.mrf.mxu1  ;;  %v1906_v45 = vadd.f32 %v1897_v37, %v1831_v42  ;;  %v1834_v3 = vadd.f32 %v1828_v35, %v1759_v57  ;;  %v2540_v57 = vpop.permute.xlu0 %2539 }
 0x2d5   : > { %v1899_v38 = vpop.f32.mrf.mxu0 }
 0x2d6   : > { %v1974_v39 = vpop.f32.mrf.mxu1  ;;  %v1907_v50 = vadd.f32 %v1899_v38, %v1832_v0  ;;  %v1981_v20 = vadd.f32 %v1972_v43, %v1906_v45 }
 0x2d7   : > { %v1901_v40 = vpop.f32.mrf.mxu0 }
 0x2d8   : > { %v1976_v13 = vpop.f32.mrf.mxu1  ;;  %v1908_v4 = vadd.f32 %v1901_v40, %v1833_v49  ;;  %v1982_v21 = vadd.f32 %v1974_v39, %v1907_v50 }
 0x2d9   : > { %v1903_v44 = vpop.f32.mrf.mxu0 }
 0x2da   : > { %v1978_v47 = vpop.f32.mrf.mxu1  ;;  %v1909_v5 = vadd.f32 %v1903_v44, %v1834_v3  ;;  %v1983_v1 = vadd.f32 %v1976_v13, %v1908_v4 }
 0x2db   : > { %v2047_v48 = vpop.f32.mrf.mxu0 }
 0x2dc   : > { %v2122_v62 = vpop.f32.mrf.mxu1  ;;  %v2056_v16 = vadd.f32 %v2047_v48, %v1981_v20  ;;  %v1984_v23 = vadd.f32 %v1978_v47, %v1909_v5 }
 0x2dd   : > { %v2049_v63 = vpop.f32.mrf.mxu0 }
 0x2de   : > { %v2124_v52 = vpop.f32.mrf.mxu1  ;;  %v2057_v61 = vadd.f32 %v2049_v63, %v1982_v21  ;;  %v2131_v60 = vadd.f32 %v2122_v62, %v2056_v16 }
 0x2df   : > { %v2051_v58 = vpop.f32.mrf.mxu0 }
 0x2e0   : > { %v2126_v22 = vpop.f32.mrf.mxu1  ;;  %v2058_v59 = vadd.f32 %v2051_v58, %v1983_v1  ;;  %v2132_v15 = vadd.f32 %v2124_v52, %v2057_v61 }
 0x2e1   : > { %v2053_v6 = vpop.f32.mrf.mxu0 }
 0x2e2   : > { %v2128_v10 = vpop.f32.mrf.mxu1  ;;  %v2059_v25 = vadd.f32 %v2053_v6, %v1984_v23  ;;  %v2133_v27 = vadd.f32 %v2126_v22, %v2058_v59 }
 0x2e3   : > { %v2197_v29 = vpop.f32.mrf.mxu0 }
 0x2e4   : > { %v2272_v12 = vpop.f32.mrf.mxu1  ;;  %v2206_v11 = vadd.f32 %v2197_v29, %v2131_v60  ;;  %v2134_v14 = vadd.f32 %v2128_v10, %v2059_v25 }
 0x2e5   : > { %v2199_v7 = vpop.f32.mrf.mxu0 }
 0x2e6   : > { %v2274_v34 = vpop.f32.mrf.mxu1  ;;  %v2207_v53 = vadd.f32 %v2199_v7, %v2132_v15  ;;  %v2281_v54 = vadd.f32 %v2272_v12, %v2206_v11 }
 0x2e7   : > { %v2201_v26 = vpop.f32.mrf.mxu0 }
 0x2e8   : > { %v2276_v8 = vpop.f32.mrf.mxu1  ;;  %v2208_v19 = vadd.f32 %v2201_v26, %v2133_v27  ;;  %v2282_v9 = vadd.f32 %v2274_v34, %v2207_v53 }
 0x2e9   : > { %v2203_v30 = vpop.f32.mrf.mxu0 }
 0x2ea   : > { %v2278_v28 = vpop.f32.mrf.mxu1  ;;  %v2209_v51 = vadd.f32 %v2203_v30, %v2134_v14  ;;  %v2283_v35 = vadd.f32 %v2276_v8, %v2208_v19 }
 0x2eb   : > { %v2347_v24 = vpop.f32.mrf.mxu0 }
 0x2ec   : > { %v2356_v31 = vadd.f32 %v2347_v24, %v2281_v54  ;;  %v2422_v32 = vpop.f32.mrf.mxu1  ;;  %v2284_v43 = vadd.f32 %v2278_v28, %v2209_v51 }
 0x2ed   : > { %v2349_v33 = vpop.f32.mrf.mxu0 }
 0x2ee   : > { %v2357_v37 = vadd.f32 %v2349_v33, %v2282_v9  ;;  %v2431_v18 = vadd.f32 %v2422_v32, %v2356_v31  ;;  %v2424_v17 = vpop.f32.mrf.mxu1 }
 0x2ef   : > { %v2351_v56 = vpop.f32.mrf.mxu0 }
 0x2f0   : > { %v2447_v38 = vadd.f32 %v2440_v2, %v2431_v18  ;;  %v2358_v36 = vadd.f32 %v2351_v56, %v2283_v35  ;;  %v2432_v55 = vadd.f32 %v2424_v17, %v2357_v37  ;;  %v2426_v39 = vpop.f32.mrf.mxu1 }
 0x2f1   : > { %v2353_v40 = vpop.f32.mrf.mxu0 }
 0x2f2   : > { %v2451_v42 = vmax.f32 %v2447_v38, 0.0  ;;  %v2448_v46 = vadd.f32 %v2440_v2, %v2432_v55  ;;  %v2359_v13 = vadd.f32 %v2353_v40, %v2284_v43  ;;  %v2433_v44 = vadd.f32 %v2426_v39, %v2358_v36  ;;  %v2428_v0 = vpop.f32.mrf.mxu1 }
 0x2f4   : > { %2455 = vst [vmem:[%s3662_s17 + $0x10] sm:$0xff] %v2451_v42  ;;  %v2452_v45 = vmax.f32 %v2448_v46, 0.0  ;;  %v2449_v47 = vadd.f32 %v2445_v41, %v2433_v44  ;;  %v2434_v48 = vadd.f32 %v2428_v0, %v2359_v13  ;;  %v2585_v49 = vpop.f32.mrf.mxu0 }
 0x2f5   : > { %v2586_v50 = vadd.f32 %v2585_v49, %v2540_v57 }
 0x2f6   : > { %2456 = vst [vmem:[%s3662_s17 + $0x18] sm:$0xff] %v2452_v45  ;;  %v2453_v62 = vmax.f32 %v2449_v47, 0.0  ;;  %v2450_v63 = vadd.f32 %v2445_v41, %v2434_v48  ;;  %v2587_v3 = vpop.f32.mrf.mxu0 }
 0x2f7   : > { %v2592_v20 = vmax.f32 %v2586_v50, 0.0  ;;  %v2588_v4 = vadd.f32 %v2587_v3, %v2540_v57 }
 0x2f8   : > { %2457 = vst [vmem:[%s3662_s17 + $0x20] sm:$0xff] %v2453_v62  ;;  %v2454_v52 = vmax.f32 %v2450_v63, 0.0  ;;  %v2589_v58 = vpop.f32.mrf.mxu0 }
 0x2f9   : > { %2594 = vst [vmem:[%s3662_s17 + $0x30] sm:$0xff] %v2592_v20  ;;  %v2593_v21 = vmax.f32 %v2588_v4, 0.0 }
 0x2fa   : > { %2458 = vst [vmem:[%s3662_s17 + $0x28] sm:$0xff] %v2454_v52  ;;  %v2590_v5 = vpop.f32.mrf.mxu0 }
 0x2fb   : > { %2595 = vst [vmem:[%s3662_s17 + $0x38] sm:$0xff] %v2593_v21 }
 0x2fc PF: > { %s17_s24 = sadd.s32 1, %s2909_s24  }
 0x2fd   : > { %p14_p4 = scmp.ge.s32.totalorder %s17_s24, 4  }
 0x2ff   :  { %16 = sbr.rel (!%p14_p4) target bundleno = 1 (0x1), region = 102 }

</bundles_post_ra>
